<compile_context>
chip_gen: v5e
topology: v5e:2x2
jax: 0.10.0
libtpu: 0.0.40
codegen_flags: <defaults>
</compile_context>

<pallas_src>
import functools
import math

import jax
import jax.numpy as jnp
from jax.experimental import pallas as pl
from jax.experimental.pallas import tpu as pltpu

LANES = 128

CFG = dict(
    B=2, C_IN=3, IMG=16, PATCH=4,
    D=128,               # GPT hidden size (lane-dense by construction)
    K=64,                # codebook entries actually used
    K_PAD=128,           # codebook rows padded to a full lane width (masked in-kernel)
    VOCAB=128,           # >= K + 1 (sos); padded to lane width
    SOS=64,
    PKEEP=0.9,
    N_HEAD=4, N_LAYER=2, BLOCK_SIZE=32,
    PATCH_FEAT_PAD=128,  # patch*patch*C (= 48) zero-padded to lane width
)


# --------------------------------------------------------------------------- #
# Fused kernel: encode + VQ + corruption + embedding + GPT blocks + LM head
# grid = (B, n_layer); one image per parallel batch step, one block per layer step
# --------------------------------------------------------------------------- #

def _vq_gpt_kernel(patch_ref, keep_ref, rand_ref,
                   enc_w_ref, enc_b_ref, cb_ref, wte_ref, wpe_ref,
                   ln1w_ref, ln1b_ref, wqkv_ref, bqkv_ref, wproj_ref, bproj_ref,
                   ln2w_ref, ln2b_ref, wfc_ref, bfc_ref, wfc2_ref, bfc2_ref,
                   lnfw_ref, lnfb_ref, whead_ref,
                   logits_ref, idx_ref, x_scr,
                   *, n_codes, n_head, sos):
    l = pl.program_id(1)
    s_len, d = x_scr.shape
    hd = d // n_head
    scale = 1.0 / math.sqrt(hd)

    def mm(a_bf, w_bf):                       # bf16 MXU operands, f32 accumulation
        return jnp.dot(a_bf, w_bf, preferred_element_type=jnp.float32)

    def layer_norm(v, w, b):                  # f32 vector-path math (v5e-safe)
        mu = jnp.mean(v, axis=-1, keepdims=True)
        cen = v - mu
        var = jnp.mean(cen * cen, axis=-1, keepdims=True)
        return cen * jax.lax.rsqrt(var + 1e-5) * w + b

    # ---- prologue (layer step 0 only): encode + VQ + corruption + embedding ----
    @pl.when(l == 0)
    def _prologue():
        patches = patch_ref[0]                                               # (S, Pf) f32
        z = mm(patches.astype(jnp.bfloat16), enc_w_ref[...]) + enc_b_ref[...]  # (S, D)
        e = cb_ref[...]                                                      # (Kp, D) f32

        # f32 distance keeps nearest-codebook / torch.argmin first-index semantics.
        z2 = jnp.sum(z * z, axis=-1, keepdims=True)
        e2 = jnp.sum(e * e, axis=-1)[None, :]
        cross = jax.lax.dot_general(z, e, (((1,), (1,)), ((), ())),
                                    preferred_element_type=jnp.float32)      # (S, Kp)
        dist = z2 + e2 - 2.0 * cross
        kp = dist.shape[1]
        kiota = jax.lax.broadcasted_iota(jnp.int32, dist.shape, 1)
        dist = jnp.where(kiota < n_codes, dist, jnp.float32(1e30))           # mask padded rows
        min_d = jnp.min(dist, axis=-1, keepdims=True)
        idx = jnp.min(jnp.where(dist <= min_d, kiota, kp), axis=-1, keepdims=True)  # (S, 1)
        idx_ref[0] = jnp.broadcast_to(idx, idx_ref.shape[1:])                # lane-dense store

        # token corruption: keep-mask / random replacement (arrays from jax.random in wrapper)
        keep = keep_ref[0]                                                   # (S, 1) int32
        rand = rand_ref[0]
        new = keep * idx + (1 - keep) * rand                                 # (S, 1) int32

        # shifted one-hot embedding: row 0 = sos, row t = new[t-1] (shift via tiny matmul)
        vocab = wte_ref.shape[0]
        viota = jax.lax.broadcasted_iota(jnp.int32, (s_len, vocab), 1)
        riota = jax.lax.broadcasted_iota(jnp.int32, (s_len, vocab), 0)
        onehot_new = (viota == new).astype(jnp.bfloat16)                     # (S, V)
        r = jax.lax.broadcasted_iota(jnp.int32, (s_len, s_len), 0)
        c = jax.lax.broadcasted_iota(jnp.int32, (s_len, s_len), 1)
        shift_p = (r == c + 1).astype(jnp.bfloat16)                          # lower sub-diagonal
        onehot = mm(shift_p, onehot_new)                                     # (S, V) f32
        onehot = onehot + ((riota == 0) & (viota == sos)).astype(jnp.float32)
        tok = mm(onehot.astype(jnp.bfloat16), wte_ref[...])                  # (S, D) f32
        x_scr[...] = tok + wpe_ref[...]

    # ---- one transformer block per inner grid step ----
    x = x_scr[...]                                                           # (S, D) f32

    row = jax.lax.broadcasted_iota(jnp.int32, (s_len, s_len), 0)
    col = jax.lax.broadcasted_iota(jnp.int32, (s_len, s_len), 1)
    bias = jnp.where(row >= col, jnp.float32(0.0), jnp.float32(-1e30))       # causal-only mask

    h = layer_norm(x, ln1w_ref[0], ln1b_ref[0])
    qkv = mm(h.astype(jnp.bfloat16), wqkv_ref[0]) + bqkv_ref[0]              # (S, 3D) f32
    q_all = (qkv[:, :d] * scale).astype(jnp.bfloat16)                        # scale folded into q
    k_all = qkv[:, d:2 * d].astype(jnp.bfloat16)
    v_all = qkv[:, 2 * d:].astype(jnp.bfloat16)

    heads = []
    for hh in range(n_head):                                                 # hd=32, 32-aligned
        lo = hh * hd
        s = jax.lax.dot_general(q_all[:, lo:lo + hd], k_all[:, lo:lo + hd],
                                (((1,), (1,)), ((), ())),
                                preferred_element_type=jnp.float32) + bias
        s = s - jnp.max(s, axis=-1, keepdims=True)
        p = jnp.exp(s)
        p = p * pl.reciprocal(jnp.sum(p, axis=-1, keepdims=True), approx=True)
        heads.append(mm(p.astype(jnp.bfloat16), v_all[:, lo:lo + hd]))       # (S, hd) f32
    y = jnp.concatenate(heads, axis=-1).astype(jnp.bfloat16)                 # (S, D)
    x = x + mm(y, wproj_ref[0]) + bproj_ref[0]                               # one K=128 proj

    h2 = layer_norm(x, ln2w_ref[0], ln2b_ref[0])
    m1 = jax.nn.gelu(mm(h2.astype(jnp.bfloat16), wfc_ref[0]) + bfc_ref[0], approximate=True)
    x = x + mm(m1.astype(jnp.bfloat16), wfc2_ref[0]) + bfc2_ref[0]
    x_scr[...] = x

    # ---- epilogue (last layer step): final LN + LM head ----
    @pl.when(l == pl.num_programs(1) - 1)
    def _epilogue():
        hf = layer_norm(x, lnfw_ref[...], lnfb_ref[...])
        logits_ref[0] = mm(hf.astype(jnp.bfloat16), whead_ref[...])


def fused_vq_gpt(patches, keep, rand_idx, params, wpe_s, cfg):
    b, seq, _ = patches.shape
    d, vocab, n_layer = cfg['D'], cfg['VOCAB'], cfg['N_LAYER']

    def per_batch(shape):
        nd = len(shape)
        return pl.BlockSpec((1,) + tuple(shape[1:]),
                            lambda bb, ll, _n=nd: (bb,) + (0,) * (_n - 1))

    def per_layer(shape):
        nd = len(shape)
        return pl.BlockSpec((1,) + tuple(shape[1:]),
                            lambda bb, ll, _n=nd: (ll,) + (0,) * (_n - 1))

    def full(shape):
        nd = len(shape)
        return pl.BlockSpec(tuple(shape), lambda bb, ll, _n=nd: (0,) * _n)

    layer_names = ['ln1_w', 'ln1_b', 'attn_w', 'attn_b', 'proj_w', 'proj_b',
                   'ln2_w', 'ln2_b', 'fc_w', 'fc_b', 'fc2_w', 'fc2_b']
    shared_pre = [params['enc_w'], params['enc_b'], params['codebook'], params['wte'], wpe_s]
    layer_ws = [params[k] for k in layer_names]
    shared_post = [params['lnf_w'], params['lnf_b'], params['head_w']]

    args = [patches, keep, rand_idx] + shared_pre + layer_ws + shared_post
    in_specs = ([per_batch(patches.shape), per_batch(keep.shape), per_batch(rand_idx.shape)]
                + [full(w.shape) for w in shared_pre]
                + [per_layer(w.shape) for w in layer_ws]
                + [full(w.shape) for w in shared_post])

    kernel = functools.partial(_vq_gpt_kernel, n_codes=cfg['K'],
                               n_head=cfg['N_HEAD'], sos=cfg['SOS'])
    logits, idx_lanes = pl.pallas_call(
        kernel,
        out_shape=(jax.ShapeDtypeStruct((b, seq, vocab), jnp.float32),
                   jax.ShapeDtypeStruct((b, seq, LANES), jnp.int32)),
        grid_spec=pltpu.PrefetchScalarGridSpec(
            num_scalar_prefetch=0,
            grid=(b, n_layer),
            in_specs=in_specs,
            out_specs=(per_batch((b, seq, vocab)), per_batch((b, seq, LANES))),
            scratch_shapes=[pltpu.VMEM((seq, d), jnp.float32)]),   # residual carried over layers
        compiler_params=pltpu.CompilerParams(
            dimension_semantics=("parallel", "arbitrary"),
            vmem_limit_bytes=32 * 1024 * 1024),
    )(*args)
    return logits, idx_lanes[:, :, 0]


# --------------------------------------------------------------------------- #
# Parameters (deterministic, synthetic -- the reference config is ckpt-based)
# --------------------------------------------------------------------------- #

def init_params(key, cfg):
    d, vocab, L = cfg['D'], cfg['VOCAB'], cfg['N_LAYER']
    pf = cfg['PATCH'] * cfg['PATCH'] * cfg['C_IN']
    keys = iter(jax.random.split(key, 32))
    bf16 = jnp.bfloat16

    def nrm(shape, scale=0.02):
        return scale * jax.random.normal(next(keys), shape, dtype=jnp.float32)

    enc_w = jnp.zeros((cfg['PATCH_FEAT_PAD'], d), jnp.float32).at[:pf].set(nrm((pf, d), 0.05))
    codebook = jnp.zeros((cfg['K_PAD'], d), jnp.float32).at[:cfg['K']].set(
        jax.random.uniform(next(keys), (cfg['K'], d), jnp.float32,
                           minval=-1.0 / cfg['K'], maxval=1.0 / cfg['K']))
    return {
        # matmul weights stored as bf16 (cast once here; f32 accumulation in-kernel)
        'enc_w': enc_w.astype(bf16),
        'enc_b': jnp.zeros((1, d), jnp.float32),
        'codebook': codebook,                      # f32: VQ distance / argmin path stays f32
        'wte': nrm((vocab, d)).astype(bf16),
        'wpe': nrm((cfg['BLOCK_SIZE'], d)),
        'lnf_w': jnp.ones((1, d), jnp.float32), 'lnf_b': jnp.zeros((1, d), jnp.float32),
        'head_w': nrm((d, vocab)).astype(bf16),
        # per-layer weights stacked on a leading layer axis (pipelined over the layer grid axis)
        'ln1_w': jnp.ones((L, 1, d), jnp.float32), 'ln1_b': jnp.zeros((L, 1, d), jnp.float32),
        'attn_w': nrm((L, d, 3 * d)).astype(bf16),
        'attn_b': jnp.zeros((L, 1, 3 * d), jnp.float32),
        'proj_w': nrm((L, d, d)).astype(bf16),
        'proj_b': jnp.zeros((L, 1, d), jnp.float32),
        'ln2_w': jnp.ones((L, 1, d), jnp.float32), 'ln2_b': jnp.zeros((L, 1, d), jnp.float32),
        'fc_w': nrm((L, d, 4 * d)).astype(bf16),
        'fc_b': jnp.zeros((L, 1, 4 * d), jnp.float32),
        'fc2_w': nrm((L, 4 * d, d)).astype(bf16),
        'fc2_b': jnp.zeros((L, 1, d), jnp.float32),
    }


# --------------------------------------------------------------------------- #
# Forward pass (mirrors VQTransformer.forward)
# --------------------------------------------------------------------------- #

def vq_transformer_forward(x_nchw, params, rng, cfg):
    b, c, hh, ww = x_nchw.shape
    p = cfg['PATCH']
    hp, wp = hh // p, ww // p
    seq = hp * wp
    vocab = cfg['VOCAB']

    # encode_to_z: patchify conv as im2col (wrapper glue)
    x_nhwc = jnp.transpose(x_nchw, (0, 2, 3, 1))
    patches = x_nhwc.reshape(b, hp, p, wp, p, c).transpose(0, 1, 3, 2, 4, 5)
    patches = patches.reshape(b, seq, p * p * c)
    patches = jnp.pad(patches, ((0, 0), (0, 0), (0, cfg['PATCH_FEAT_PAD'] - p * p * c)))

    # token-corruption randomness stays in the wrapper (jax.random semantics), passed as arrays
    k_mask, k_rand = jax.random.split(rng)
    keep = jax.random.bernoulli(k_mask, cfg['PKEEP'], (b, seq, 1)).astype(jnp.int32)
    rand_idx = jax.random.randint(k_rand, (b, seq, 1), 0, vocab, dtype=jnp.int32)

    wpe_s = params['wpe'][:seq]
    logits, indices = fused_vq_gpt(patches, keep, rand_idx, params, wpe_s, cfg)
    return logits, indices


# --------------------------------------------------------------------------- #

if __name__ == "__main__":
    cfg = CFG
    key = jax.random.PRNGKey(0)
    k_params, k_input, k_fwd = jax.random.split(key, 3)

    params = init_params(k_params, cfg)
    x = jax.random.normal(k_input, (cfg['B'], cfg['C_IN'], cfg['IMG'], cfg['IMG']),
                          dtype=jnp.float32)

    fwd = jax.jit(functools.partial(vq_transformer_forward, cfg=cfg))
    logits, target = fwd(x, params, k_fwd)
    jax.block_until_ready((logits, target))

    seq = (cfg['IMG'] // cfg['PATCH']) ** 2
    assert logits.shape == (cfg['B'], seq, cfg['VOCAB'])
    assert target.shape == (cfg['B'], seq)
    assert target.dtype == jnp.int32
    assert bool(jnp.all((target >= 0) & (target < cfg['K'])))
    assert bool(jnp.all(jnp.isfinite(logits)))

    print("KERNEL_OK")
</pallas_src>

<mosaic_0001>
module attributes {stable_mosaic.version = 11 : i64} {
  func.func @_vq_gpt_kernel(%arg0: i32, %arg1: i32, %arg2: memref<1x16x128xf32, #tpu.memory_space<vmem>>, %arg3: memref<1x16x1xi32, #tpu.memory_space<vmem>>, %arg4: memref<1x16x1xi32, #tpu.memory_space<vmem>>, %arg5: memref<128x128xbf16, #tpu.memory_space<vmem>>, %arg6: memref<1x128xf32, #tpu.memory_space<vmem>>, %arg7: memref<128x128xf32, #tpu.memory_space<vmem>>, %arg8: memref<128x128xbf16, #tpu.memory_space<vmem>>, %arg9: memref<16x128xf32, #tpu.memory_space<vmem>>, %arg10: memref<1x1x128xf32, #tpu.memory_space<vmem>>, %arg11: memref<1x1x128xf32, #tpu.memory_space<vmem>>, %arg12: memref<1x128x384xbf16, #tpu.memory_space<vmem>>, %arg13: memref<1x1x384xf32, #tpu.memory_space<vmem>>, %arg14: memref<1x128x128xbf16, #tpu.memory_space<vmem>>, %arg15: memref<1x1x128xf32, #tpu.memory_space<vmem>>, %arg16: memref<1x1x128xf32, #tpu.memory_space<vmem>>, %arg17: memref<1x1x128xf32, #tpu.memory_space<vmem>>, %arg18: memref<1x128x512xbf16, #tpu.memory_space<vmem>>, %arg19: memref<1x1x512xf32, #tpu.memory_space<vmem>>, %arg20: memref<1x512x128xbf16, #tpu.memory_space<vmem>>, %arg21: memref<1x1x128xf32, #tpu.memory_space<vmem>>, %arg22: memref<1x128xf32, #tpu.memory_space<vmem>>, %arg23: memref<1x128xf32, #tpu.memory_space<vmem>>, %arg24: memref<128x128xbf16, #tpu.memory_space<vmem>>, %arg25: memref<1x16x128xf32, #tpu.memory_space<vmem>>, %arg26: memref<1x16x128xi32, #tpu.memory_space<vmem>>, %arg27: memref<16x128xf32, #tpu.memory_space<vmem>>) attributes {dimension_semantics = [#tpu.dimension_semantics<parallel>, #tpu.dimension_semantics<arbitrary>], iteration_bounds = array<i64: 2, 2>, scalar_prefetch = 0 : i64, scratch_operands = 1 : i64, tpu.core_type = #tpu.core_type<tc>, window_params = [{transform_indices = @transform_0, window_bounds = array<i64: 1, 16, 128>}, {transform_indices = @transform_1, window_bounds = array<i64: 1, 16, 1>}, {transform_indices = @transform_2, window_bounds = array<i64: 1, 16, 1>}, {pipeline_mode = #tpu.pipeline_mode<synchronous>, transform_indices = @transform_3, window_bounds = array<i64: 128, 128>}, {pipeline_mode = #tpu.pipeline_mode<synchronous>, transform_indices = @transform_4, window_bounds = array<i64: 1, 128>}, {pipeline_mode = #tpu.pipeline_mode<synchronous>, transform_indices = @transform_5, window_bounds = array<i64: 128, 128>}, {pipeline_mode = #tpu.pipeline_mode<synchronous>, transform_indices = @transform_6, window_bounds = array<i64: 128, 128>}, {pipeline_mode = #tpu.pipeline_mode<synchronous>, transform_indices = @transform_7, window_bounds = array<i64: 16, 128>}, {transform_indices = @transform_8, window_bounds = array<i64: 1, 1, 128>}, {transform_indices = @transform_9, window_bounds = array<i64: 1, 1, 128>}, {transform_indices = @transform_10, window_bounds = array<i64: 1, 128, 384>}, {transform_indices = @transform_11, window_bounds = array<i64: 1, 1, 384>}, {transform_indices = @transform_12, window_bounds = array<i64: 1, 128, 128>}, {transform_indices = @transform_13, window_bounds = array<i64: 1, 1, 128>}, {transform_indices = @transform_14, window_bounds = array<i64: 1, 1, 128>}, {transform_indices = @transform_15, window_bounds = array<i64: 1, 1, 128>}, {transform_indices = @transform_16, window_bounds = array<i64: 1, 128, 512>}, {transform_indices = @transform_17, window_bounds = array<i64: 1, 1, 512>}, {transform_indices = @transform_18, window_bounds = array<i64: 1, 512, 128>}, {transform_indices = @transform_19, window_bounds = array<i64: 1, 1, 128>}, {pipeline_mode = #tpu.pipeline_mode<synchronous>, transform_indices = @transform_20, window_bounds = array<i64: 1, 128>}, {pipeline_mode = #tpu.pipeline_mode<synchronous>, transform_indices = @transform_21, window_bounds = array<i64: 1, 128>}, {pipeline_mode = #tpu.pipeline_mode<synchronous>, transform_indices = @transform_22, window_bounds = array<i64: 128, 128>}, {transform_indices = @transform_23, window_bounds = array<i64: 1, 16, 128>}, {transform_indices = @transform_24, window_bounds = array<i64: 1, 16, 128>}]} {
    %c0_i32 = arith.constant 0 : i32
    %0 = arith.cmpi eq, %arg1, %c0_i32 : i32
    %1 = arith.extui %0 : i1 to i32
    %c0_i32_0 = arith.constant 0 : i32
    %2 = arith.cmpi ne, %1, %c0_i32_0 : i32
    scf.if %2 {
      %c0_77 = arith.constant 0 : index
      %c0_78 = arith.constant 0 : index
      %c0_79 = arith.constant 0 : index
      %186 = vector.load %arg2[%c0_77, %c0_78, %c0_79] : memref<1x16x128xf32, #tpu.memory_space<vmem>>, vector<1x16x128xf32>
      %187 = vector.shape_cast %186 : vector<1x16x128xf32> to vector<16x128xf32>
      %188 = arith.truncf %187 : vector<16x128xf32> to vector<16x128xbf16>
      %c0_80 = arith.constant 0 : index
      %c0_81 = arith.constant 0 : index
      %189 = vector.load %arg5[%c0_80, %c0_81] : memref<128x128xbf16, #tpu.memory_space<vmem>>, vector<128x128xbf16>
      %cst_82 = arith.constant dense<0.000000e+00> : vector<16x128xf32>
      %190 = tpu.matmul %188, %189, %cst_82 {dimension_numbers = #tpu.dot_dimension_numbers<[1], [0], [0], [1], [0, 0, 1, 1], [], []>} : vector<16x128xbf16>, vector<128x128xbf16>, vector<16x128xf32> -> vector<16x128xf32>
      %c0_83 = arith.constant 0 : index
      %c0_84 = arith.constant 0 : index
      %191 = vector.load %arg6[%c0_83, %c0_84] : memref<1x128xf32, #tpu.memory_space<vmem>>, vector<1x128xf32>
      %192 = vector.broadcast %191 : vector<1x128xf32> to vector<16x128xf32>
      %193 = arith.addf %190, %192 : vector<16x128xf32>
      %c0_85 = arith.constant 0 : index
      %c0_86 = arith.constant 0 : index
      %194 = vector.load %arg7[%c0_85, %c0_86] : memref<128x128xf32, #tpu.memory_space<vmem>>, vector<128x128xf32>
      %195 = arith.mulf %193, %193 : vector<16x128xf32>
      %cst_87 = arith.constant dense<0.000000e+00> : vector<16xf32>
      %196 = vector.multi_reduction <add>, %195, %cst_87 [1] : vector<16x128xf32> to vector<16xf32>
      %197 = vector.shape_cast %196 : vector<16xf32> to vector<16x1xf32>
      %198 = arith.mulf %194, %194 : vector<128x128xf32>
      %cst_88 = arith.constant dense<0.000000e+00> : vector<128xf32>
      %199 = vector.multi_reduction <add>, %198, %cst_88 [1] : vector<128x128xf32> to vector<128xf32>
      %200 = vector.shape_cast %199 : vector<128xf32> to vector<1x128xf32>
      %cst_89 = arith.constant dense<0.000000e+00> : vector<16x128xf32>
      %201 = tpu.matmul %193, %194, %cst_89 {dimension_numbers = #tpu.dot_dimension_numbers<[1], [1], [0], [0], [0, 0, 1, 0], [], []>} : vector<16x128xf32>, vector<128x128xf32>, vector<16x128xf32> -> vector<16x128xf32>
      %202 = vector.broadcast %197 : vector<16x1xf32> to vector<16x128xf32>
      %203 = vector.broadcast %200 : vector<1x128xf32> to vector<16x128xf32>
      %204 = arith.addf %202, %203 : vector<16x128xf32>
      %cst_90 = arith.constant 2.000000e+00 : f32
      %205 = vector.broadcast %cst_90 : f32 to vector<16x128xf32>
      %206 = arith.mulf %205, %201 : vector<16x128xf32>
      %207 = arith.subf %204, %206 : vector<16x128xf32>
      %208 = tpu.iota {dimensions = array<i32: 1>} : vector<16x128xi32>
      %c64_i32 = arith.constant 64 : i32
      %209 = vector.broadcast %c64_i32 : i32 to vector<16x128xi32>
      %210 = arith.cmpi slt, %208, %209 : vector<16x128xi32>
      %cst_91 = arith.constant 1.000000e+30 : f32
      %211 = vector.broadcast %cst_91 : f32 to vector<16x128xf32>
      %212 = arith.select %210, %207, %211 : vector<16x128xi1>, vector<16x128xf32>
      %cst_92 = arith.constant dense<0x7F800000> : vector<16xf32>
      %213 = vector.multi_reduction <minimumf>, %212, %cst_92 [1] : vector<16x128xf32> to vector<16xf32>
      %214 = vector.shape_cast %213 : vector<16xf32> to vector<16x1xf32>
      %215 = vector.broadcast %214 : vector<16x1xf32> to vector<16x128xf32>
      %216 = arith.cmpf ole, %212, %215 : vector<16x128xf32>
      %c128_i32 = arith.constant 128 : i32
      %217 = vector.broadcast %c128_i32 : i32 to vector<16x128xi32>
      %218 = arith.select %216, %208, %217 : vector<16x128xi1>, vector<16x128xi32>
      %cst_93 = arith.constant dense<2147483647> : vector<16xi32>
      %219 = vector.multi_reduction <minsi>, %218, %cst_93 [1] : vector<16x128xi32> to vector<16xi32>
      %220 = vector.shape_cast %219 : vector<16xi32> to vector<16x1xi32>
      %221 = vector.shape_cast %220 : vector<16x1xi32> to vector<16x1xi32>
      %222 = vector.broadcast %221 : vector<16x1xi32> to vector<16x128xi32>
      %c0_94 = arith.constant 0 : index
      %c0_95 = arith.constant 0 : index
      %c0_96 = arith.constant 0 : index
      %223 = vector.load %arg26[%c0_94, %c0_95, %c0_96] : memref<1x16x128xi32, #tpu.memory_space<vmem>>, vector<1x16x128xi32>
      %224 = vector.shape_cast %223 : vector<1x16x128xi32> to vector<16x128xi32>
      %225 = vector.shape_cast %222 : vector<16x128xi32> to vector<1x16x128xi32>
      tpu.vector_store %arg26[%c0_94, %c0_95, %c0_96], %225 {strides = array<i32>} : memref<1x16x128xi32, #tpu.memory_space<vmem>>, vector<1x16x128xi32>,
      %c0_97 = arith.constant 0 : index
      %c0_98 = arith.constant 0 : index
      %c0_99 = arith.constant 0 : index
      %226 = vector.load %arg3[%c0_97, %c0_98, %c0_99] : memref<1x16x1xi32, #tpu.memory_space<vmem>>, vector<1x16x1xi32>
      %227 = vector.shape_cast %226 : vector<1x16x1xi32> to vector<16x1xi32>
      %c0_100 = arith.constant 0 : index
      %c0_101 = arith.constant 0 : index
      %c0_102 = arith.constant 0 : index
      %228 = vector.load %arg4[%c0_100, %c0_101, %c0_102] : memref<1x16x1xi32, #tpu.memory_space<vmem>>, vector<1x16x1xi32>
      %229 = vector.shape_cast %228 : vector<1x16x1xi32> to vector<16x1xi32>
      %230 = arith.muli %227, %220 : vector<16x1xi32>
      %c1_i32_103 = arith.constant 1 : i32
      %231 = vector.broadcast %c1_i32_103 : i32 to vector<16x1xi32>
      %232 = arith.subi %231, %227 : vector<16x1xi32>
      %233 = arith.muli %232, %229 : vector<16x1xi32>
      %234 = arith.addi %230, %233 : vector<16x1xi32>
      %235 = tpu.iota {dimensions = array<i32: 1>} : vector<16x128xi32>
      %236 = tpu.iota {dimensions = array<i32: 0>} : vector<16x128xi32>
      %237 = vector.broadcast %234 : vector<16x1xi32> to vector<16x128xi32>
      %238 = arith.cmpi eq, %235, %237 : vector<16x128xi32>
      %239 = arith.extui %238 : vector<16x128xi1> to vector<16x128xi32>
      %240 = arith.sitofp %239 : vector<16x128xi32> to vector<16x128xf32>
      %241 = arith.truncf %240 : vector<16x128xf32> to vector<16x128xbf16>
      %242 = tpu.iota {dimensions = array<i32: 0>} : vector<16x16xi32>
      %243 = tpu.iota {dimensions = array<i32: 1>} : vector<16x16xi32>
      %c1_i32_104 = arith.constant 1 : i32
      %244 = vector.broadcast %c1_i32_104 : i32 to vector<16x16xi32>
      %245 = arith.addi %243, %244 : vector<16x16xi32>
      %246 = arith.cmpi eq, %242, %245 : vector<16x16xi32>
      %247 = arith.extui %246 : vector<16x16xi1> to vector<16x16xi32>
      %248 = arith.sitofp %247 : vector<16x16xi32> to vector<16x16xf32>
      %249 = arith.truncf %248 : vector<16x16xf32> to vector<16x16xbf16>
      %cst_105 = arith.constant dense<0.000000e+00> : vector<16x128xf32>
      %250 = tpu.matmul %249, %241, %cst_105 {dimension_numbers = #tpu.dot_dimension_numbers<[1], [0], [0], [1], [0, 0, 1, 1], [], []>} : vector<16x16xbf16>, vector<16x128xbf16>, vector<16x128xf32> -> vector<16x128xf32>
      %c0_i32_106 = arith.constant 0 : i32
      %251 = vector.broadcast %c0_i32_106 : i32 to vector<16x128xi32>
      %252 = arith.cmpi eq, %236, %251 : vector<16x128xi32>
      %c64_i32_107 = arith.constant 64 : i32
      %253 = vector.broadcast %c64_i32_107 : i32 to vector<16x128xi32>
      %254 = arith.cmpi eq, %235, %253 : vector<16x128xi32>
      %255 = arith.andi %252, %254 : vector<16x128xi1>
      %256 = arith.extui %255 : vector<16x128xi1> to vector<16x128xi32>
      %257 = arith.sitofp %256 : vector<16x128xi32> to vector<16x128xf32>
      %258 = arith.addf %250, %257 : vector<16x128xf32>
      %259 = arith.truncf %258 : vector<16x128xf32> to vector<16x128xbf16>
      %c0_108 = arith.constant 0 : index
      %c0_109 = arith.constant 0 : index
      %260 = vector.load %arg8[%c0_108, %c0_109] : memref<128x128xbf16, #tpu.memory_space<vmem>>, vector<128x128xbf16>
      %cst_110 = arith.constant dense<0.000000e+00> : vector<16x128xf32>
      %261 = tpu.matmul %259, %260, %cst_110 {dimension_numbers = #tpu.dot_dimension_numbers<[1], [0], [0], [1], [0, 0, 1, 1], [], []>} : vector<16x128xbf16>, vector<128x128xbf16>, vector<16x128xf32> -> vector<16x128xf32>
      %c0_111 = arith.constant 0 : index
      %c0_112 = arith.constant 0 : index
      %262 = vector.load %arg9[%c0_111, %c0_112] : memref<16x128xf32, #tpu.memory_space<vmem>>, vector<16x128xf32>
      %263 = arith.addf %261, %262 : vector<16x128xf32>
      %c0_113 = arith.constant 0 : index
      %c0_114 = arith.constant 0 : index
      %264 = vector.load %arg27[%c0_113, %c0_114] : memref<16x128xf32, #tpu.memory_space<vmem>>, vector<16x128xf32>
      tpu.vector_store %arg27[%c0_113, %c0_114], %263 {strides = array<i32>} : memref<16x128xf32, #tpu.memory_space<vmem>>, vector<16x128xf32>,
    } else {
    }
    %c0 = arith.constant 0 : index
    %c0_1 = arith.constant 0 : index
    %3 = vector.load %arg27[%c0, %c0_1] : memref<16x128xf32, #tpu.memory_space<vmem>>, vector<16x128xf32>
    %4 = tpu.iota {dimensions = array<i32: 0>} : vector<16x16xi32>
    %5 = tpu.iota {dimensions = array<i32: 1>} : vector<16x16xi32>
    %6 = arith.cmpi sge, %4, %5 : vector<16x16xi32>
    %cst = arith.constant 0.000000e+00 : f32
    %cst_2 = arith.constant -1.000000e+30 : f32
    %7 = vector.broadcast %cst : f32 to vector<16x16xf32>
    %8 = vector.broadcast %cst_2 : f32 to vector<16x16xf32>
    %9 = arith.select %6, %7, %8 : vector<16x16xi1>, vector<16x16xf32>
    %c0_3 = arith.constant 0 : index
    %c0_4 = arith.constant 0 : index
    %c0_5 = arith.constant 0 : index
    %10 = vector.load %arg10[%c0_3, %c0_4, %c0_5] : memref<1x1x128xf32, #tpu.memory_space<vmem>>, vector<1x1x128xf32>
    %11 = vector.shape_cast %10 : vector<1x1x128xf32> to vector<1x128xf32>
    %c0_6 = arith.constant 0 : index
    %c0_7 = arith.constant 0 : index
    %c0_8 = arith.constant 0 : index
    %12 = vector.load %arg11[%c0_6, %c0_7, %c0_8] : memref<1x1x128xf32, #tpu.memory_space<vmem>>, vector<1x1x128xf32>
    %13 = vector.shape_cast %12 : vector<1x1x128xf32> to vector<1x128xf32>
    %cst_9 = arith.constant dense<0.000000e+00> : vector<16xf32>
    %14 = vector.multi_reduction <add>, %3, %cst_9 [1] : vector<16x128xf32> to vector<16xf32>
    %15 = vector.shape_cast %14 : vector<16xf32> to vector<16x1xf32>
    %cst_10 = arith.constant 1.280000e+02 : f32
    %16 = vector.broadcast %cst_10 : f32 to vector<16x1xf32>
    %17 = arith.divf %15, %16 : vector<16x1xf32>
    %18 = vector.broadcast %17 : vector<16x1xf32> to vector<16x128xf32>
    %19 = arith.subf %3, %18 : vector<16x128xf32>
    %20 = arith.mulf %19, %19 : vector<16x128xf32>
    %cst_11 = arith.constant dense<0.000000e+00> : vector<16xf32>
    %21 = vector.multi_reduction <add>, %20, %cst_11 [1] : vector<16x128xf32> to vector<16xf32>
    %22 = vector.shape_cast %21 : vector<16xf32> to vector<16x1xf32>
    %cst_12 = arith.constant 1.280000e+02 : f32
    %23 = vector.broadcast %cst_12 : f32 to vector<16x1xf32>
    %24 = arith.divf %22, %23 : vector<16x1xf32>
    %cst_13 = arith.constant 9.99999974E-6 : f32
    %25 = vector.broadcast %cst_13 : f32 to vector<16x1xf32>
    %26 = arith.addf %24, %25 : vector<16x1xf32>
    %27 = math.rsqrt %26 : vector<16x1xf32>
    %28 = vector.broadcast %27 : vector<16x1xf32> to vector<16x128xf32>
    %29 = arith.mulf %19, %28 : vector<16x128xf32>
    %30 = vector.broadcast %11 : vector<1x128xf32> to vector<16x128xf32>
    %31 = arith.mulf %29, %30 : vector<16x128xf32>
    %32 = vector.broadcast %13 : vector<1x128xf32> to vector<16x128xf32>
    %33 = arith.addf %31, %32 : vector<16x128xf32>
    %34 = arith.truncf %33 : vector<16x128xf32> to vector<16x128xbf16>
    %c0_14 = arith.constant 0 : index
    %c0_15 = arith.constant 0 : index
    %c0_16 = arith.constant 0 : index
    %35 = vector.load %arg12[%c0_14, %c0_15, %c0_16] : memref<1x128x384xbf16, #tpu.memory_space<vmem>>, vector<1x128x384xbf16>
    %36 = vector.shape_cast %35 : vector<1x128x384xbf16> to vector<128x384xbf16>
    %cst_17 = arith.constant dense<0.000000e+00> : vector<16x384xf32>
    %37 = tpu.matmul %34, %36, %cst_17 {dimension_numbers = #tpu.dot_dimension_numbers<[1], [0], [0], [1], [0, 0, 1, 1], [], []>} : vector<16x128xbf16>, vector<128x384xbf16>, vector<16x384xf32> -> vector<16x384xf32>
    %c0_18 = arith.constant 0 : index
    %c0_19 = arith.constant 0 : index
    %c0_20 = arith.constant 0 : index
    %38 = vector.load %arg13[%c0_18, %c0_19, %c0_20] : memref<1x1x384xf32, #tpu.memory_space<vmem>>, vector<1x1x384xf32>
    %39 = vector.shape_cast %38 : vector<1x1x384xf32> to vector<1x384xf32>
    %40 = vector.broadcast %39 : vector<1x384xf32> to vector<16x384xf32>
    %41 = arith.addf %37, %40 : vector<16x384xf32>
    %42 = vector.extract_strided_slice %41 {offsets = [0, 0], sizes = [16, 128], strides = [1, 1]} : vector<16x384xf32> to vector<16x128xf32>
    %cst_21 = arith.constant 0.176776692 : f32
    %43 = vector.broadcast %cst_21 : f32 to vector<16x128xf32>
    %44 = arith.mulf %42, %43 : vector<16x128xf32>
    %45 = arith.truncf %44 : vector<16x128xf32> to vector<16x128xbf16>
    %46 = vector.extract_strided_slice %41 {offsets = [0, 128], sizes = [16, 128], strides = [1, 1]} : vector<16x384xf32> to vector<16x128xf32>
    %47 = arith.truncf %46 : vector<16x128xf32> to vector<16x128xbf16>
    %48 = vector.extract_strided_slice %41 {offsets = [0, 256], sizes = [16, 128], strides = [1, 1]} : vector<16x384xf32> to vector<16x128xf32>
    %49 = arith.truncf %48 : vector<16x128xf32> to vector<16x128xbf16>
    %50 = vector.extract_strided_slice %45 {offsets = [0, 0], sizes = [16, 32], strides = [1, 1]} : vector<16x128xbf16> to vector<16x32xbf16>
    %51 = vector.extract_strided_slice %47 {offsets = [0, 0], sizes = [16, 32], strides = [1, 1]} : vector<16x128xbf16> to vector<16x32xbf16>
    %cst_22 = arith.constant dense<0.000000e+00> : vector<16x16xf32>
    %52 = tpu.matmul %50, %51, %cst_22 {dimension_numbers = #tpu.dot_dimension_numbers<[1], [1], [0], [0], [0, 0, 1, 0], [], []>} : vector<16x32xbf16>, vector<16x32xbf16>, vector<16x16xf32> -> vector<16x16xf32>
    %53 = arith.addf %52, %9 : vector<16x16xf32>
    %cst_23 = arith.constant dense<0xFF800000> : vector<16xf32>
    %54 = vector.multi_reduction <maximumf>, %53, %cst_23 [1] : vector<16x16xf32> to vector<16xf32>
    %55 = vector.shape_cast %54 : vector<16xf32> to vector<16x1xf32>
    %56 = vector.broadcast %55 : vector<16x1xf32> to vector<16x16xf32>
    %57 = arith.subf %53, %56 : vector<16x16xf32>
    %58 = math.exp %57 : vector<16x16xf32>
    %cst_24 = arith.constant dense<0.000000e+00> : vector<16xf32>
    %59 = vector.multi_reduction <add>, %58, %cst_24 [1] : vector<16x16xf32> to vector<16xf32>
    %60 = vector.shape_cast %59 : vector<16xf32> to vector<16x1xf32>
    %61 = tpu.reciprocal %60 {approx = true} : vector<16x1xf32> -> vector<16x1xf32>
    %62 = vector.broadcast %61 : vector<16x1xf32> to vector<16x16xf32>
    %63 = arith.mulf %58, %62 : vector<16x16xf32>
    %64 = arith.truncf %63 : vector<16x16xf32> to vector<16x16xbf16>
    %65 = vector.extract_strided_slice %49 {offsets = [0, 0], sizes = [16, 32], strides = [1, 1]} : vector<16x128xbf16> to vector<16x32xbf16>
    %cst_25 = arith.constant dense<0.000000e+00> : vector<16x32xf32>
    %66 = tpu.matmul %64, %65, %cst_25 {dimension_numbers = #tpu.dot_dimension_numbers<[1], [0], [0], [1], [0, 0, 1, 1], [], []>} : vector<16x16xbf16>, vector<16x32xbf16>, vector<16x32xf32> -> vector<16x32xf32>
    %67 = vector.extract_strided_slice %45 {offsets = [0, 32], sizes = [16, 32], strides = [1, 1]} : vector<16x128xbf16> to vector<16x32xbf16>
    %68 = vector.extract_strided_slice %47 {offsets = [0, 32], sizes = [16, 32], strides = [1, 1]} : vector<16x128xbf16> to vector<16x32xbf16>
    %cst_26 = arith.constant dense<0.000000e+00> : vector<16x16xf32>
    %69 = tpu.matmul %67, %68, %cst_26 {dimension_numbers = #tpu.dot_dimension_numbers<[1], [1], [0], [0], [0, 0, 1, 0], [], []>} : vector<16x32xbf16>, vector<16x32xbf16>, vector<16x16xf32> -> vector<16x16xf32>
    %70 = arith.addf %69, %9 : vector<16x16xf32>
    %cst_27 = arith.constant dense<0xFF800000> : vector<16xf32>
    %71 = vector.multi_reduction <maximumf>, %70, %cst_27 [1] : vector<16x16xf32> to vector<16xf32>
    %72 = vector.shape_cast %71 : vector<16xf32> to vector<16x1xf32>
    %73 = vector.broadcast %72 : vector<16x1xf32> to vector<16x16xf32>
    %74 = arith.subf %70, %73 : vector<16x16xf32>
    %75 = math.exp %74 : vector<16x16xf32>
    %cst_28 = arith.constant dense<0.000000e+00> : vector<16xf32>
    %76 = vector.multi_reduction <add>, %75, %cst_28 [1] : vector<16x16xf32> to vector<16xf32>
    %77 = vector.shape_cast %76 : vector<16xf32> to vector<16x1xf32>
    %78 = tpu.reciprocal %77 {approx = true} : vector<16x1xf32> -> vector<16x1xf32>
    %79 = vector.broadcast %78 : vector<16x1xf32> to vector<16x16xf32>
    %80 = arith.mulf %75, %79 : vector<16x16xf32>
    %81 = arith.truncf %80 : vector<16x16xf32> to vector<16x16xbf16>
    %82 = vector.extract_strided_slice %49 {offsets = [0, 32], sizes = [16, 32], strides = [1, 1]} : vector<16x128xbf16> to vector<16x32xbf16>
    %cst_29 = arith.constant dense<0.000000e+00> : vector<16x32xf32>
    %83 = tpu.matmul %81, %82, %cst_29 {dimension_numbers = #tpu.dot_dimension_numbers<[1], [0], [0], [1], [0, 0, 1, 1], [], []>} : vector<16x16xbf16>, vector<16x32xbf16>, vector<16x32xf32> -> vector<16x32xf32>
    %84 = vector.extract_strided_slice %45 {offsets = [0, 64], sizes = [16, 32], strides = [1, 1]} : vector<16x128xbf16> to vector<16x32xbf16>
    %85 = vector.extract_strided_slice %47 {offsets = [0, 64], sizes = [16, 32], strides = [1, 1]} : vector<16x128xbf16> to vector<16x32xbf16>
    %cst_30 = arith.constant dense<0.000000e+00> : vector<16x16xf32>
    %86 = tpu.matmul %84, %85, %cst_30 {dimension_numbers = #tpu.dot_dimension_numbers<[1], [1], [0], [0], [0, 0, 1, 0], [], []>} : vector<16x32xbf16>, vector<16x32xbf16>, vector<16x16xf32> -> vector<16x16xf32>
    %87 = arith.addf %86, %9 : vector<16x16xf32>
    %cst_31 = arith.constant dense<0xFF800000> : vector<16xf32>
    %88 = vector.multi_reduction <maximumf>, %87, %cst_31 [1] : vector<16x16xf32> to vector<16xf32>
    %89 = vector.shape_cast %88 : vector<16xf32> to vector<16x1xf32>
    %90 = vector.broadcast %89 : vector<16x1xf32> to vector<16x16xf32>
    %91 = arith.subf %87, %90 : vector<16x16xf32>
    %92 = math.exp %91 : vector<16x16xf32>
    %cst_32 = arith.constant dense<0.000000e+00> : vector<16xf32>
    %93 = vector.multi_reduction <add>, %92, %cst_32 [1] : vector<16x16xf32> to vector<16xf32>
    %94 = vector.shape_cast %93 : vector<16xf32> to vector<16x1xf32>
    %95 = tpu.reciprocal %94 {approx = true} : vector<16x1xf32> -> vector<16x1xf32>
    %96 = vector.broadcast %95 : vector<16x1xf32> to vector<16x16xf32>
    %97 = arith.mulf %92, %96 : vector<16x16xf32>
    %98 = arith.truncf %97 : vector<16x16xf32> to vector<16x16xbf16>
    %99 = vector.extract_strided_slice %49 {offsets = [0, 64], sizes = [16, 32], strides = [1, 1]} : vector<16x128xbf16> to vector<16x32xbf16>
    %cst_33 = arith.constant dense<0.000000e+00> : vector<16x32xf32>
    %100 = tpu.matmul %98, %99, %cst_33 {dimension_numbers = #tpu.dot_dimension_numbers<[1], [0], [0], [1], [0, 0, 1, 1], [], []>} : vector<16x16xbf16>, vector<16x32xbf16>, vector<16x32xf32> -> vector<16x32xf32>
    %101 = vector.extract_strided_slice %45 {offsets = [0, 96], sizes = [16, 32], strides = [1, 1]} : vector<16x128xbf16> to vector<16x32xbf16>
    %102 = vector.extract_strided_slice %47 {offsets = [0, 96], sizes = [16, 32], strides = [1, 1]} : vector<16x128xbf16> to vector<16x32xbf16>
    %cst_34 = arith.constant dense<0.000000e+00> : vector<16x16xf32>
    %103 = tpu.matmul %101, %102, %cst_34 {dimension_numbers = #tpu.dot_dimension_numbers<[1], [1], [0], [0], [0, 0, 1, 0], [], []>} : vector<16x32xbf16>, vector<16x32xbf16>, vector<16x16xf32> -> vector<16x16xf32>
    %104 = arith.addf %103, %9 : vector<16x16xf32>
    %cst_35 = arith.constant dense<0xFF800000> : vector<16xf32>
    %105 = vector.multi_reduction <maximumf>, %104, %cst_35 [1] : vector<16x16xf32> to vector<16xf32>
    %106 = vector.shape_cast %105 : vector<16xf32> to vector<16x1xf32>
    %107 = vector.broadcast %106 : vector<16x1xf32> to vector<16x16xf32>
    %108 = arith.subf %104, %107 : vector<16x16xf32>
    %109 = math.exp %108 : vector<16x16xf32>
    %cst_36 = arith.constant dense<0.000000e+00> : vector<16xf32>
    %110 = vector.multi_reduction <add>, %109, %cst_36 [1] : vector<16x16xf32> to vector<16xf32>
    %111 = vector.shape_cast %110 : vector<16xf32> to vector<16x1xf32>
    %112 = tpu.reciprocal %111 {approx = true} : vector<16x1xf32> -> vector<16x1xf32>
    %113 = vector.broadcast %112 : vector<16x1xf32> to vector<16x16xf32>
    %114 = arith.mulf %109, %113 : vector<16x16xf32>
    %115 = arith.truncf %114 : vector<16x16xf32> to vector<16x16xbf16>
    %116 = vector.extract_strided_slice %49 {offsets = [0, 96], sizes = [16, 32], strides = [1, 1]} : vector<16x128xbf16> to vector<16x32xbf16>
    %cst_37 = arith.constant dense<0.000000e+00> : vector<16x32xf32>
    %117 = tpu.matmul %115, %116, %cst_37 {dimension_numbers = #tpu.dot_dimension_numbers<[1], [0], [0], [1], [0, 0, 1, 1], [], []>} : vector<16x16xbf16>, vector<16x32xbf16>, vector<16x32xf32> -> vector<16x32xf32>
    %118 = tpu.concatenate %66, %83, %100, %117 in 1 : vector<16x32xf32>, vector<16x32xf32>, vector<16x32xf32>, vector<16x32xf32> -> vector<16x128xf32>
    %119 = arith.truncf %118 : vector<16x128xf32> to vector<16x128xbf16>
    %c0_38 = arith.constant 0 : index
    %c0_39 = arith.constant 0 : index
    %c0_40 = arith.constant 0 : index
    %120 = vector.load %arg14[%c0_38, %c0_39, %c0_40] : memref<1x128x128xbf16, #tpu.memory_space<vmem>>, vector<1x128x128xbf16>
    %121 = vector.shape_cast %120 : vector<1x128x128xbf16> to vector<128x128xbf16>
    %cst_41 = arith.constant dense<0.000000e+00> : vector<16x128xf32>
    %122 = tpu.matmul %119, %121, %cst_41 {dimension_numbers = #tpu.dot_dimension_numbers<[1], [0], [0], [1], [0, 0, 1, 1], [], []>} : vector<16x128xbf16>, vector<128x128xbf16>, vector<16x128xf32> -> vector<16x128xf32>
    %123 = arith.addf %3, %122 : vector<16x128xf32>
    %c0_42 = arith.constant 0 : index
    %c0_43 = arith.constant 0 : index
    %c0_44 = arith.constant 0 : index
    %124 = vector.load %arg15[%c0_42, %c0_43, %c0_44] : memref<1x1x128xf32, #tpu.memory_space<vmem>>, vector<1x1x128xf32>
    %125 = vector.shape_cast %124 : vector<1x1x128xf32> to vector<1x128xf32>
    %126 = vector.broadcast %125 : vector<1x128xf32> to vector<16x128xf32>
    %127 = arith.addf %123, %126 : vector<16x128xf32>
    %c0_45 = arith.constant 0 : index
    %c0_46 = arith.constant 0 : index
    %c0_47 = arith.constant 0 : index
    %128 = vector.load %arg16[%c0_45, %c0_46, %c0_47] : memref<1x1x128xf32, #tpu.memory_space<vmem>>, vector<1x1x128xf32>
    %129 = vector.shape_cast %128 : vector<1x1x128xf32> to vector<1x128xf32>
    %c0_48 = arith.constant 0 : index
    %c0_49 = arith.constant 0 : index
    %c0_50 = arith.constant 0 : index
    %130 = vector.load %arg17[%c0_48, %c0_49, %c0_50] : memref<1x1x128xf32, #tpu.memory_space<vmem>>, vector<1x1x128xf32>
    %131 = vector.shape_cast %130 : vector<1x1x128xf32> to vector<1x128xf32>
    %cst_51 = arith.constant dense<0.000000e+00> : vector<16xf32>
    %132 = vector.multi_reduction <add>, %127, %cst_51 [1] : vector<16x128xf32> to vector<16xf32>
    %133 = vector.shape_cast %132 : vector<16xf32> to vector<16x1xf32>
    %cst_52 = arith.constant 1.280000e+02 : f32
    %134 = vector.broadcast %cst_52 : f32 to vector<16x1xf32>
    %135 = arith.divf %133, %134 : vector<16x1xf32>
    %136 = vector.broadcast %135 : vector<16x1xf32> to vector<16x128xf32>
    %137 = arith.subf %127, %136 : vector<16x128xf32>
    %138 = arith.mulf %137, %137 : vector<16x128xf32>
    %cst_53 = arith.constant dense<0.000000e+00> : vector<16xf32>
    %139 = vector.multi_reduction <add>, %138, %cst_53 [1] : vector<16x128xf32> to vector<16xf32>
    %140 = vector.shape_cast %139 : vector<16xf32> to vector<16x1xf32>
    %cst_54 = arith.constant 1.280000e+02 : f32
    %141 = vector.broadcast %cst_54 : f32 to vector<16x1xf32>
    %142 = arith.divf %140, %141 : vector<16x1xf32>
    %cst_55 = arith.constant 9.99999974E-6 : f32
    %143 = vector.broadcast %cst_55 : f32 to vector<16x1xf32>
    %144 = arith.addf %142, %143 : vector<16x1xf32>
    %145 = math.rsqrt %144 : vector<16x1xf32>
    %146 = vector.broadcast %145 : vector<16x1xf32> to vector<16x128xf32>
    %147 = arith.mulf %137, %146 : vector<16x128xf32>
    %148 = vector.broadcast %129 : vector<1x128xf32> to vector<16x128xf32>
    %149 = arith.mulf %147, %148 : vector<16x128xf32>
    %150 = vector.broadcast %131 : vector<1x128xf32> to vector<16x128xf32>
    %151 = arith.addf %149, %150 : vector<16x128xf32>
    %152 = arith.truncf %151 : vector<16x128xf32> to vector<16x128xbf16>
    %c0_56 = arith.constant 0 : index
    %c0_57 = arith.constant 0 : index
    %c0_58 = arith.constant 0 : index
    %153 = vector.load %arg18[%c0_56, %c0_57, %c0_58] : memref<1x128x512xbf16, #tpu.memory_space<vmem>>, vector<1x128x512xbf16>
    %154 = vector.shape_cast %153 : vector<1x128x512xbf16> to vector<128x512xbf16>
    %cst_59 = arith.constant dense<0.000000e+00> : vector<16x512xf32>
    %155 = tpu.matmul %152, %154, %cst_59 {dimension_numbers = #tpu.dot_dimension_numbers<[1], [0], [0], [1], [0, 0, 1, 1], [], []>} : vector<16x128xbf16>, vector<128x512xbf16>, vector<16x512xf32> -> vector<16x512xf32>
    %c0_60 = arith.constant 0 : index
    %c0_61 = arith.constant 0 : index
    %c0_62 = arith.constant 0 : index
    %156 = vector.load %arg19[%c0_60, %c0_61, %c0_62] : memref<1x1x512xf32, #tpu.memory_space<vmem>>, vector<1x1x512xf32>
    %157 = vector.shape_cast %156 : vector<1x1x512xf32> to vector<1x512xf32>
    %158 = vector.broadcast %157 : vector<1x512xf32> to vector<16x512xf32>
    %159 = arith.addf %155, %158 : vector<16x512xf32>
    %160 = arith.mulf %159, %159 : vector<16x512xf32>
    %161 = arith.mulf %159, %160 : vector<16x512xf32>
    %cst_63 = arith.constant 4.471500e-02 : f32
    %162 = vector.broadcast %cst_63 : f32 to vector<16x512xf32>
    %163 = arith.mulf %162, %161 : vector<16x512xf32>
    %164 = arith.addf %159, %163 : vector<16x512xf32>
    %cst_64 = arith.constant 0.797884583 : f32
    %165 = vector.broadcast %cst_64 : f32 to vector<16x512xf32>
    %166 = arith.mulf %165, %164 : vector<16x512xf32>
    %167 = math.tanh %166 : vector<16x512xf32>
    %cst_65 = arith.constant 1.000000e+00 : f32
    %168 = vector.broadcast %cst_65 : f32 to vector<16x512xf32>
    %169 = arith.addf %168, %167 : vector<16x512xf32>
    %cst_66 = arith.constant 5.000000e-01 : f32
    %170 = vector.broadcast %cst_66 : f32 to vector<16x512xf32>
    %171 = arith.mulf %170, %169 : vector<16x512xf32>
    %172 = arith.mulf %159, %171 : vector<16x512xf32>
    %173 = arith.truncf %172 : vector<16x512xf32> to vector<16x512xbf16>
    %c0_67 = arith.constant 0 : index
    %c0_68 = arith.constant 0 : index
    %c0_69 = arith.constant 0 : index
    %174 = vector.load %arg20[%c0_67, %c0_68, %c0_69] : memref<1x512x128xbf16, #tpu.memory_space<vmem>>, vector<1x512x128xbf16>
    %175 = vector.shape_cast %174 : vector<1x512x128xbf16> to vector<512x128xbf16>
    %cst_70 = arith.constant dense<0.000000e+00> : vector<16x128xf32>
    %176 = tpu.matmul %173, %175, %cst_70 {dimension_numbers = #tpu.dot_dimension_numbers<[1], [0], [0], [1], [0, 0, 1, 1], [], []>} : vector<16x512xbf16>, vector<512x128xbf16>, vector<16x128xf32> -> vector<16x128xf32>
    %177 = arith.addf %127, %176 : vector<16x128xf32>
    %c0_71 = arith.constant 0 : index
    %c0_72 = arith.constant 0 : index
    %c0_73 = arith.constant 0 : index
    %178 = vector.load %arg21[%c0_71, %c0_72, %c0_73] : memref<1x1x128xf32, #tpu.memory_space<vmem>>, vector<1x1x128xf32>
    %179 = vector.shape_cast %178 : vector<1x1x128xf32> to vector<1x128xf32>
    %180 = vector.broadcast %179 : vector<1x128xf32> to vector<16x128xf32>
    %181 = arith.addf %177, %180 : vector<16x128xf32>
    %c0_74 = arith.constant 0 : index
    %c0_75 = arith.constant 0 : index
    %182 = vector.load %arg27[%c0_74, %c0_75] : memref<16x128xf32, #tpu.memory_space<vmem>>, vector<16x128xf32>
    tpu.vector_store %arg27[%c0_74, %c0_75], %181 {strides = array<i32>} : memref<16x128xf32, #tpu.memory_space<vmem>>, vector<16x128xf32>,
    %c1_i32 = arith.constant 1 : i32
    %183 = arith.cmpi eq, %arg1, %c1_i32 : i32
    %184 = arith.extui %183 : i1 to i32
    %c0_i32_76 = arith.constant 0 : i32
    %185 = arith.cmpi ne, %184, %c0_i32_76 : i32
    scf.if %185 {
      %c0_77 = arith.constant 0 : index
      %c0_78 = arith.constant 0 : index
      %186 = vector.load %arg22[%c0_77, %c0_78] : memref<1x128xf32, #tpu.memory_space<vmem>>, vector<1x128xf32>
      %c0_79 = arith.constant 0 : index
      %c0_80 = arith.constant 0 : index
      %187 = vector.load %arg23[%c0_79, %c0_80] : memref<1x128xf32, #tpu.memory_space<vmem>>, vector<1x128xf32>
      %cst_81 = arith.constant dense<0.000000e+00> : vector<16xf32>
      %188 = vector.multi_reduction <add>, %181, %cst_81 [1] : vector<16x128xf32> to vector<16xf32>
      %189 = vector.shape_cast %188 : vector<16xf32> to vector<16x1xf32>
      %cst_82 = arith.constant 1.280000e+02 : f32
      %190 = vector.broadcast %cst_82 : f32 to vector<16x1xf32>
      %191 = arith.divf %189, %190 : vector<16x1xf32>
      %192 = vector.broadcast %191 : vector<16x1xf32> to vector<16x128xf32>
      %193 = arith.subf %181, %192 : vector<16x128xf32>
      %194 = arith.mulf %193, %193 : vector<16x128xf32>
      %cst_83 = arith.constant dense<0.000000e+00> : vector<16xf32>
      %195 = vector.multi_reduction <add>, %194, %cst_83 [1] : vector<16x128xf32> to vector<16xf32>
      %196 = vector.shape_cast %195 : vector<16xf32> to vector<16x1xf32>
      %cst_84 = arith.constant 1.280000e+02 : f32
      %197 = vector.broadcast %cst_84 : f32 to vector<16x1xf32>
      %198 = arith.divf %196, %197 : vector<16x1xf32>
      %cst_85 = arith.constant 9.99999974E-6 : f32
      %199 = vector.broadcast %cst_85 : f32 to vector<16x1xf32>
      %200 = arith.addf %198, %199 : vector<16x1xf32>
      %201 = math.rsqrt %200 : vector<16x1xf32>
      %202 = vector.broadcast %201 : vector<16x1xf32> to vector<16x128xf32>
      %203 = arith.mulf %193, %202 : vector<16x128xf32>
      %204 = vector.broadcast %186 : vector<1x128xf32> to vector<16x128xf32>
      %205 = arith.mulf %203, %204 : vector<16x128xf32>
      %206 = vector.broadcast %187 : vector<1x128xf32> to vector<16x128xf32>
      %207 = arith.addf %205, %206 : vector<16x128xf32>
      %208 = arith.truncf %207 : vector<16x128xf32> to vector<16x128xbf16>
      %c0_86 = arith.constant 0 : index
      %c0_87 = arith.constant 0 : index
      %209 = vector.load %arg24[%c0_86, %c0_87] : memref<128x128xbf16, #tpu.memory_space<vmem>>, vector<128x128xbf16>
      %cst_88 = arith.constant dense<0.000000e+00> : vector<16x128xf32>
      %210 = tpu.matmul %208, %209, %cst_88 {dimension_numbers = #tpu.dot_dimension_numbers<[1], [0], [0], [1], [0, 0, 1, 1], [], []>} : vector<16x128xbf16>, vector<128x128xbf16>, vector<16x128xf32> -> vector<16x128xf32>
      %c0_89 = arith.constant 0 : index
      %c0_90 = arith.constant 0 : index
      %c0_91 = arith.constant 0 : index
      %211 = vector.load %arg25[%c0_89, %c0_90, %c0_91] : memref<1x16x128xf32, #tpu.memory_space<vmem>>, vector<1x16x128xf32>
      %212 = vector.shape_cast %211 : vector<1x16x128xf32> to vector<16x128xf32>
      %213 = vector.shape_cast %210 : vector<16x128xf32> to vector<1x16x128xf32>
      tpu.vector_store %arg25[%c0_89, %c0_90, %c0_91], %213 {strides = array<i32>} : memref<1x16x128xf32, #tpu.memory_space<vmem>>, vector<1x16x128xf32>,
    } else {
    }
    return
  }
  func.func @transform_0(%arg0: i32, %arg1: i32) -> (i32, i32, i32) {
    %c0_i32 = arith.constant 0 : i32
    %c0_i32_0 = arith.constant 0 : i32
    %c0_i32_1 = arith.constant 0 : i32
    return %arg0, %c0_i32, %c0_i32_0 : i32, i32, i32
  }
  func.func @transform_1(%arg0: i32, %arg1: i32) -> (i32, i32, i32) {
    %c0_i32 = arith.constant 0 : i32
    %c0_i32_0 = arith.constant 0 : i32
    %c0_i32_1 = arith.constant 0 : i32
    return %arg0, %c0_i32, %c0_i32_0 : i32, i32, i32
  }
  func.func @transform_2(%arg0: i32, %arg1: i32) -> (i32, i32, i32) {
    %c0_i32 = arith.constant 0 : i32
    %c0_i32_0 = arith.constant 0 : i32
    %c0_i32_1 = arith.constant 0 : i32
    return %arg0, %c0_i32, %c0_i32_0 : i32, i32, i32
  }
  func.func @transform_3(%arg0: i32, %arg1: i32) -> (i32, i32) {
    %c0_i32 = arith.constant 0 : i32
    %c0_i32_0 = arith.constant 0 : i32
    %c0_i32_1 = arith.constant 0 : i32
    return %c0_i32, %c0_i32_0 : i32, i32
  }
  func.func @transform_4(%arg0: i32, %arg1: i32) -> (i32, i32) {
    %c0_i32 = arith.constant 0 : i32
    %c0_i32_0 = arith.constant 0 : i32
    %c0_i32_1 = arith.constant 0 : i32
    return %c0_i32, %c0_i32_0 : i32, i32
  }
  func.func @transform_5(%arg0: i32, %arg1: i32) -> (i32, i32) {
    %c0_i32 = arith.constant 0 : i32
    %c0_i32_0 = arith.constant 0 : i32
    %c0_i32_1 = arith.constant 0 : i32
    return %c0_i32, %c0_i32_0 : i32, i32
  }
  func.func @transform_6(%arg0: i32, %arg1: i32) -> (i32, i32) {
    %c0_i32 = arith.constant 0 : i32
    %c0_i32_0 = arith.constant 0 : i32
    %c0_i32_1 = arith.constant 0 : i32
    return %c0_i32, %c0_i32_0 : i32, i32
  }
  func.func @transform_7(%arg0: i32, %arg1: i32) -> (i32, i32) {
    %c0_i32 = arith.constant 0 : i32
    %c0_i32_0 = arith.constant 0 : i32
    %c0_i32_1 = arith.constant 0 : i32
    return %c0_i32, %c0_i32_0 : i32, i32
  }
  func.func @transform_8(%arg0: i32, %arg1: i32) -> (i32, i32, i32) {
    %c0_i32 = arith.constant 0 : i32
    %c0_i32_0 = arith.constant 0 : i32
    %c0_i32_1 = arith.constant 0 : i32
    return %arg1, %c0_i32, %c0_i32_0 : i32, i32, i32
  }
  func.func @transform_9(%arg0: i32, %arg1: i32) -> (i32, i32, i32) {
    %c0_i32 = arith.constant 0 : i32
    %c0_i32_0 = arith.constant 0 : i32
    %c0_i32_1 = arith.constant 0 : i32
    return %arg1, %c0_i32, %c0_i32_0 : i32, i32, i32
  }
  func.func @transform_10(%arg0: i32, %arg1: i32) -> (i32, i32, i32) {
    %c0_i32 = arith.constant 0 : i32
    %c0_i32_0 = arith.constant 0 : i32
    %c0_i32_1 = arith.constant 0 : i32
    return %arg1, %c0_i32, %c0_i32_0 : i32, i32, i32
  }
  func.func @transform_11(%arg0: i32, %arg1: i32) -> (i32, i32, i32) {
    %c0_i32 = arith.constant 0 : i32
    %c0_i32_0 = arith.constant 0 : i32
    %c0_i32_1 = arith.constant 0 : i32
    return %arg1, %c0_i32, %c0_i32_0 : i32, i32, i32
  }
  func.func @transform_12(%arg0: i32, %arg1: i32) -> (i32, i32, i32) {
    %c0_i32 = arith.constant 0 : i32
    %c0_i32_0 = arith.constant 0 : i32
    %c0_i32_1 = arith.constant 0 : i32
    return %arg1, %c0_i32, %c0_i32_0 : i32, i32, i32
  }
  func.func @transform_13(%arg0: i32, %arg1: i32) -> (i32, i32, i32) {
    %c0_i32 = arith.constant 0 : i32
    %c0_i32_0 = arith.constant 0 : i32
    %c0_i32_1 = arith.constant 0 : i32
    return %arg1, %c0_i32, %c0_i32_0 : i32, i32, i32
  }
  func.func @transform_14(%arg0: i32, %arg1: i32) -> (i32, i32, i32) {
    %c0_i32 = arith.constant 0 : i32
    %c0_i32_0 = arith.constant 0 : i32
    %c0_i32_1 = arith.constant 0 : i32
    return %arg1, %c0_i32, %c0_i32_0 : i32, i32, i32
  }
  func.func @transform_15(%arg0: i32, %arg1: i32) -> (i32, i32, i32) {
    %c0_i32 = arith.constant 0 : i32
    %c0_i32_0 = arith.constant 0 : i32
    %c0_i32_1 = arith.constant 0 : i32
    return %arg1, %c0_i32, %c0_i32_0 : i32, i32, i32
  }
  func.func @transform_16(%arg0: i32, %arg1: i32) -> (i32, i32, i32) {
    %c0_i32 = arith.constant 0 : i32
    %c0_i32_0 = arith.constant 0 : i32
    %c0_i32_1 = arith.constant 0 : i32
    return %arg1, %c0_i32, %c0_i32_0 : i32, i32, i32
  }
  func.func @transform_17(%arg0: i32, %arg1: i32) -> (i32, i32, i32) {
    %c0_i32 = arith.constant 0 : i32
    %c0_i32_0 = arith.constant 0 : i32
    %c0_i32_1 = arith.constant 0 : i32
    return %arg1, %c0_i32, %c0_i32_0 : i32, i32, i32
  }
  func.func @transform_18(%arg0: i32, %arg1: i32) -> (i32, i32, i32) {
    %c0_i32 = arith.constant 0 : i32
    %c0_i32_0 = arith.constant 0 : i32
    %c0_i32_1 = arith.constant 0 : i32
    return %arg1, %c0_i32, %c0_i32_0 : i32, i32, i32
  }
  func.func @transform_19(%arg0: i32, %arg1: i32) -> (i32, i32, i32) {
    %c0_i32 = arith.constant 0 : i32
    %c0_i32_0 = arith.constant 0 : i32
    %c0_i32_1 = arith.constant 0 : i32
    return %arg1, %c0_i32, %c0_i32_0 : i32, i32, i32
  }
  func.func @transform_20(%arg0: i32, %arg1: i32) -> (i32, i32) {
    %c0_i32 = arith.constant 0 : i32
    %c0_i32_0 = arith.constant 0 : i32
    %c0_i32_1 = arith.constant 0 : i32
    return %c0_i32, %c0_i32_0 : i32, i32
  }
  func.func @transform_21(%arg0: i32, %arg1: i32) -> (i32, i32) {
    %c0_i32 = arith.constant 0 : i32
    %c0_i32_0 = arith.constant 0 : i32
    %c0_i32_1 = arith.constant 0 : i32
    return %c0_i32, %c0_i32_0 : i32, i32
  }
  func.func @transform_22(%arg0: i32, %arg1: i32) -> (i32, i32) {
    %c0_i32 = arith.constant 0 : i32
    %c0_i32_0 = arith.constant 0 : i32
    %c0_i32_1 = arith.constant 0 : i32
    return %c0_i32, %c0_i32_0 : i32, i32
  }
  func.func @transform_23(%arg0: i32, %arg1: i32) -> (i32, i32, i32) {
    %c0_i32 = arith.constant 0 : i32
    %c0_i32_0 = arith.constant 0 : i32
    %c0_i32_1 = arith.constant 0 : i32
    return %arg0, %c0_i32, %c0_i32_0 : i32, i32, i32
  }
  func.func @transform_24(%arg0: i32, %arg1: i32) -> (i32, i32, i32) {
    %c0_i32 = arith.constant 0 : i32
    %c0_i32_0 = arith.constant 0 : i32
    %c0_i32_1 = arith.constant 0 : i32
    return %arg0, %c0_i32, %c0_i32_0 : i32, i32, i32
  }
}

</mosaic_0001>

<bundles_post_ra>
// kernel: vq_transformer_forward.1
= control target key start
LH: loop header
LB: loop body
LE: loop exit
PB: predicated region body
PF: predicated region fallthrough
CT: control target
= control target key end

     0   :  { %s5080_s0 = inlined_call_operand.vmem [shape: f32[2,16,128], index: 0, kind: input, shape index: {}]   ;;  %s5081_s1 = inlined_call_operand.vmem [shape: s32[2,16,1], index: 1, kind: input, shape index: {}]   ;;  %s5082_s2 = inlined_call_operand.vmem [shape: s32[2,16,1], index: 2, kind: input, shape index: {}]   ;;  %s5083_s3 = inlined_call_operand.vmem [shape: bf16[128,128], index: 3, kind: input, shape index: {}]   ;;  %s5084_s4 = inlined_call_operand.vmem [shape: f32[1,128], index: 4, kind: input, shape index: {}]   ;;  %s5085_s5 = inlined_call_operand.vmem [shape: f32[128,128], index: 5, kind: input, shape index: {}]   ;;  %s5086_s6 = inlined_call_operand.vmem [shape: bf16[128,128], index: 6, kind: input, shape index: {}]   ;;  %s5087_s7 = inlined_call_operand.vmem [shape: f32[16,128], index: 7, kind: input, shape index: {}]   ;;  %s5088_s8 = inlined_call_operand.vmem [shape: f32[2,1,128], index: 8, kind: input, shape index: {}]   ;;  %s5089_s9 = inlined_call_operand.vmem [shape: f32[2,1,128], index: 9, kind: input, shape index: {}]   ;;  %s5090_s10 = inlined_call_operand.vmem [shape: bf16[2,128,384], index: 10, kind: input, shape index: {}]   ;;  %s5091_s11 = inlined_call_operand.vmem [shape: f32[2,1,384], index: 11, kind: input, shape index: {}]   ;;  %s5092_s12 = inlined_call_operand.vmem [shape: bf16[2,128,128], index: 12, kind: input, shape index: {}]   ;;  %s5093_s13 = inlined_call_operand.vmem [shape: f32[2,1,128], index: 13, kind: input, shape index: {}]   ;;  %s5094_s14 = inlined_call_operand.vmem [shape: f32[2,1,128], index: 14, kind: input, shape index: {}]   ;;  %s5095_s15 = inlined_call_operand.vmem [shape: f32[2,1,128], index: 15, kind: input, shape index: {}]   ;;  %s5096_s16 = inlined_call_operand.vmem [shape: bf16[2,128,512], index: 16, kind: input, shape index: {}]   ;;  %s5097_s17 = inlined_call_operand.vmem [shape: f32[2,1,512], index: 17, kind: input, shape index: {}]   ;;  %s5098_s18 = inlined_call_operand.vmem [shape: bf16[2,512,128], index: 18, kind: input, shape index: {}]   ;;  %s5099_s19 = inlined_call_operand.vmem [shape: f32[2,1,128], index: 19, kind: input, shape index: {}]   ;;  %s5100_s20 = inlined_call_operand.vmem [shape: f32[1,128], index: 20, kind: input, shape index: {}]   ;;  %s5101_s21 = inlined_call_operand.vmem [shape: f32[1,128], index: 21, kind: input, shape index: {}]   ;;  %s5102_s22 = inlined_call_operand.vmem [shape: bf16[128,128], index: 22, kind: input, shape index: {}]   ;;  %s5103_s23 = inlined_call_operand.hbm [shape: f32[2,16,128], index: 23, kind: output, shape index: {0}]   ;;  %s5104_s24 = inlined_call_operand.vmem [shape: s32[2,16,128], index: 24, kind: output, shape index: {1}]  }
   0x1   :  { %5126 = sst [smem:[#allocation20_spill]] %s5080_s0 }
   0x2   :  { %5127 = sst [smem:[#allocation21_spill]] %s5081_s1 }
   0x3   :  { %5128 = sst [smem:[#allocation22_spill]] %s5082_s2 }
   0x4   :  { %5129 = sst [smem:[#allocation23_spill]] %s5083_s3 }
   0x5   :  { %5130 = sst [smem:[#allocation24_spill]] %s5084_s4 }
   0x6   :  { %5131 = sst [smem:[#allocation25_spill]] %s5085_s5 }
   0x7   :  { %5132 = sst [smem:[#allocation26_spill]] %s5086_s6 }
   0x8   :  { %5133 = sst [smem:[#allocation27_spill]] %s5087_s7 }
   0x9   :  { %5134 = sst [smem:[#allocation28_spill]] %s5088_s8 }
   0xa   :  { %5135 = sst [smem:[#allocation29_spill]] %s5089_s9 }
   0xb   :  { %5136 = sst [smem:[#allocation30_spill]] %s5090_s10 }
   0xc   :  { %5137 = sst [smem:[#allocation31_spill]] %s5091_s11 }
   0xd   :  { %5138 = sst [smem:[#allocation32_spill]] %s5092_s12 }
   0xe   :  { %5139 = sst [smem:[#allocation33_spill]] %s5095_s15 }
   0xf   :  { %5140 = sst [smem:[#allocation34_spill]] %s5096_s16 }
  0x10   :  { %5141 = sst [smem:[#allocation35_spill]] %s5099_s19 }
  0x11   :  { %5142 = sst [smem:[#allocation36_spill]] %s5100_s20 }
  0x12   :  { %5143 = sst [smem:[#allocation37_spill]] %s5101_s21 }
  0x13   :  { %5144 = sst [smem:[#allocation38_spill]] %s5102_s22 }
  0x14   :  { %5145 = sst [smem:[#allocation39_spill]] %s5103_s23 }
  0x15   :  { %5146 = sst [smem:[#allocation40_spill]] %s5104_s24 }
  0x16   :  { %30 = vsyncpa [#allocation4], 0 }
  0x17   :  { %32 = vsyncpa [#allocation4 + $0x1], 0  ;;  %s4327_s5 = smov 0   ;;  %s4329_s26 = smov 0  }
  0x18   :  { %s4331_s27 = smov 0   ;;  %s4333_s28 = smov 0  }
  0x19   :  { %s4335_s6 = smov 0   ;;  %s4337_s2 = smov 0  }
  0x1a   :  { %s4339_s29 = smov 0   ;;  %s4341_s0 = smov 0  }
  0x1b LB: > { %5147 = sst [smem:[#allocation6_spill]] %s4162_s5  ;;  %s3272_s7 = sadd.s32 4294967295, %s4190_s0   ;;  %s4190_s0 = sphi %s4341_s0, %s38_s0   ;;  %s4186_s29 = sphi %s4339_s29, %s5211_s29   ;;  %s4182_s2 = sphi %s4337_s2, %s5210_s2   ;;  %s4178_s6 = sphi %s4335_s6, %s5209_s6   ;;  %s4174_s28 = sphi %s4333_s28, %s5208_s28   ;;  %s4170_s27 = sphi %s4331_s27, %s5207_s27   ;;  %s4166_s26 = sphi %s4329_s26, %s5206_s26   ;;  %s4162_s5 = sphi %s4327_s5, %s5205_s5  }
  0x1c   : > { %5148 = sst [smem:[#allocation7_spill]] %s4166_s26  ;;  %s3273_s30 = sadd.s32 4294967294, %s4190_s0  }
  0x1d   : > { %5149 = sst [smem:[#allocation8_spill]] %s4170_s27  ;;  %s47_s3 = sadd.s32 1, %s4182_s2 }
  0x1e   : > { %5150 = sst [smem:[#allocation9_spill]] %s4174_s28  ;;  %p48_p0 = scmp.ge.s32.totalorder %s47_s3, 2 }
  0x1f   : > { %5151 = sst [smem:[#allocation10_spill]] %s4178_s6  ;;  %s50_s25 = sadd.s32 1, %s4186_s29 }
  0x20   : > { %5152 = sst [smem:[#allocation11_spill]] %s4182_s2  ;;  %p625_p1 = scmp.ne.s32.totalorder %s4170_s27, %s4166_s26 }
  0x21   : > { %5153 = sst [smem:[#allocation12_spill]] %s4186_s29  ;;  %p626_p2 = scmp.eq.s32.totalorder %s3272_s7, 3 }
  0x22   : > { %5154 = sst [smem:[#allocation13_spill]] %s4190_s0  ;;  %s5213_s3 = smov (%p48_p0, %s47_s3), 0 }
  0x23   : > { %5155 = sst [smem:[#allocation14_spill]] %s5213_s3  ;;  %s5215_s25 = smov (!%p48_p0, %s50_s25), %s4186_s29 }
  0x24   : > { %p4376_p3 = por %p626_p2, %p625_p1  ;;  %p631_p4 = scmp.ne.s32.totalorder %s4166_s26, %s4162_s5 }
  0x25   : > { %p52_p5 = scmp.ge.s32.totalorder %s5215_s25, 2  ;;  %p632_p6 = scmp.eq.s32.totalorder %s3273_s30, 3 }
  0x26   : > { %s5156_s8 = scalar_select %p4376_p3, 1, 0 }
  0x27   : > { %p3276_p7 = scmp.ge.s32.totalorder %s4190_s0, 1  ;;  %p806_p8 = scmp.lt.s32.totalorder %s4190_s0, 5 }
  0x28   : > { %5157 = sst [smem:[#allocation15_spill]] %s5156_s8  ;;  %s5217_s25 = smov (%p52_p5, %s5215_s25), 0 }
  0x29   : > { %5158 = sst [smem:[#allocation16_spill]] %s5217_s25  ;;  %p4386_p9 = por %p632_p6, %p631_p4 }
  0x2a   : > { %p807_p10 = pnand %p3276_p7, %p806_p8  ;;  %s612_s1 = ssub.s32 %s4186_s29, %s5217_s25 }
  0x2b   : > { %s5159_s4 = scalar_select %p4386_p9, 1, 0 }
  0x2c   : > { %s615_s7 = sadd.s32 1, %s4170_s27  ;;  %p613_p11 = scmp.eq.s32.totalorder %s612_s1, 0 }
  0x2d   : > { %5160 = sst [smem:[#allocation17_spill]] %s5159_s4  ;;  %810 = sbr.rel (%p807_p10) target bundleno = 3829 (0xef5), region = 112 }
  0x2e   : > { %s4394_s3 = scalar_select %p613_p11, %s4170_s27, %s615_s7  }
  0x30   : > { %5161 = sst [smem:[#allocation18_spill]] %s4394_s3 }
  0x32   : > { %s5114_s30 = sand.u32 1, %s4166_s26   ;;  %p933_p12 = scmp.lt.s32.totalorder %s4178_s6, 1 }
  0x33   : > { %s3277_s2 = sshll.u32 %s5114_s30, 4  ;;  %p948_p13 = scmp.lt.s32.totalorder %s4174_s28, 1 }
  0x34   : > { %s934_s5 = scalar_select %p933_p12, %s4178_s6, 1 }
  0x35   : > { %s4403_s4 = scalar_select %p948_p13, %s4174_s28, 1 }
  0x36   : > { %s3797_s1 = sshll.u32 %s934_s5, 4  ;;  %s5162_s29 = sld [smem:[#allocation20_spill]] }
  0x37   : > { %s5164_s0 = sld [smem:[#allocation21_spill]]  ;;  %s3925_s25 = smul.u32 192, %s4403_s4 }
  0x38   : > { %s5165_s6 = sld [smem:[#allocation22_spill]]  ;;  %s3926_s7 = smul.u32 3, %s4403_s4 }
  0x39   : > { %s5168_s10 = sld [smem:[#allocation30_spill]]  ;;  %s3801_s26 = sshll.u32 %s4403_s4, 8 }
  0x3a   : > { %s5169_s12 = sld [smem:[#allocation32_spill]]  ;;  %s4473_s9 = scalar_lea.vmem %s5098_s18, %s3801_s26 }
  0x3b   : > { %s5170_s11 = sld [smem:[#allocation31_spill]] }
  0x3c   : > { %s4408_s3 = scalar_lea.vmem %s5162_s29, %s3797_s1  ;;  %s5172_s16 = sld [smem:[#allocation34_spill]] }
  0x3d   : > { %5163 = sst [smem:[#allocation19_spill]] %s4408_s3  ;;  %s4413_s23 = scalar_lea.vmem %s5164_s0, %s3797_s1 }
  0x3e   : > { %s4418_s21 = scalar_lea.vmem %s5165_s6, %s3797_s1  ;;  %s3800_s3 = sshll.u32 %s4403_s4, 6 }
  0x3f   : > { %s4434_s30 = scalar_lea.vmem %s5168_s10, %s3925_s25  ;;  %s5173_s0 = sld [smem:[#allocation35_spill]] }
  0x40   : > { %s4439_s8 = scalar_lea.vmem %s5169_s12, %s3800_s3  ;;  %s3289_s3 = sshll.u32 %s4403_s4, 2 }
  0x41   : > { %s4444_s28 = scalar_lea.vmem %s5170_s11, %s3926_s7  ;;  %s4468_s19 = scalar_lea.vmem %s5097_s17, %s3289_s3 }
  0x42   : > { %s4463_s20 = scalar_lea.vmem %s5172_s16, %s3801_s26  ;;  %s5174_s15 = sld [smem:[#allocation40_spill]] }
  0x43   : > { %s4484_s6 = scalar_lea.vmem [#allocation3], %s3277_s2  ;;  %s5175_s16 = sld [smem:[#allocation9_spill]] }
  0x45   : > { %s993_s10 = scalar_lea.vmem %s5173_s0, %s4403_s4 }
  0x48   : > { %s4482_s12 = scalar_lea.vmem %s5174_s15, %s3797_s1 }
  0x49   : > { %p3294_p0 = scmp.ne.s32.totalorder %s5175_s16, 0 }
  0x4a   : > { %s5176_s22 = sld [smem:[#allocation23_spill]] (!%p3294_p0) }
  0x4b   : > { %1003 = sbr.rel (%p3294_p0) target bundleno = 1148 (0x47c), region = 116  ;;  %s5177_s25 = sld [smem:[#allocation25_spill]] (!%p3294_p0) }
  0x4c   : > { %s5178_s0 = sld [smem:[#allocation19_spill]] (!%p3294_p0) }
  0x4d   : > { %s5180_s7 = sld [smem:[#allocation26_spill]] (!%p3294_p0) }
  0x4e   : > { %s5181_s29 = sld [smem:[#allocation27_spill]] (!%p3294_p0) }
  0x50   : > { %v3811_v0 = vld [vmem:[%s5176_s22 + $0x38] sm:$0xff]  ;;  %v3810_v1 = vld [vmem:[%s5176_s22 + $0x30] sm:$0xff]  ;;  %v3809_v8 = vld [vmem:[%s5176_s22 + $0x28] sm:$0xff]  ;;  %v1198_v50 = vlaneseq  ;;  %vm1203_vm0 = vcmask 130112   ;;  %vm1207_vm1 = vcmask 195712   ;;  %vm1211_vm2 = vcmask 261312  }
  0x51   : > { %1075 = vmatpush.bf16.msra.mxu0 %v3811_v0  ;;  %v4496_v2 = vld [vmem:[%s5177_s25 + $0x78] sm:$0xff]  ;;  %v4502_v3 = vld [vmem:[%s5177_s25] sm:$0xff]  ;;  %v4507_v4 = vld [vmem:[%s5177_s25 + $0x70] sm:$0xff]  ;;  %vm1215_vm3 = vcmask 326912   ;;  %vm1219_vm4 = vcmask 392512   ;;  %vm1223_vm5 = vcmask 458112  }
  0x52   : > { %1159 = vmatpush.xpose.msra.mxu1 %v4496_v2  ;;  %v1111_v5 = vmul.f32 %v4502_v3, %v4502_v3  ;;  %v4514_v6 = vld [vmem:[%s5177_s25 + $0x10] sm:$0xff]  ;;  %v4519_v7 = vld [vmem:[%s5177_s25 + $0x20] sm:$0xff]  ;;  %v4532_v11 = vld [vmem:[%s5177_s25 + $0x8] sm:$0xff]  ;;  %v1125_v41 = vmul.f32 %v4507_v4, %v4507_v4  ;;  %v1126_v42 = vmul.f32 %v4496_v2, %v4496_v2  ;;  %v4595_v52 = vand.u32 127, %v1198_v50 }
  0x53   : > { %v1113_v9 = vmul.f32 %v4514_v6, %v4514_v6  ;;  %v1115_v10 = vmul.f32 %v4519_v7, %v4519_v7  ;;  %v1102_v12 = vld [vmem:[%s5177_s25 + $0x68] sm:$0xff]  ;;  %v1092_v13 = vld [vmem:[%s5177_s25 + $0x18] sm:$0xff]  ;;  %v3808_v14 = vld [vmem:[%s5176_s22 + $0x20] sm:$0xff]  ;;  %v1112_v16 = vmul.f32 %v4532_v11, %v4532_v11  ;;  %vm1227_vm6 = vcmask 523712  }
  0x54   : > { %1127 = vadd.xlane.f32.xlu0 %v1111_v5  ;;  %v1094_v15 = vld [vmem:[%s5177_s25 + $0x28] sm:$0xff]  ;;  %v1114_v17 = vmul.f32 %v1092_v13, %v1092_v13  ;;  %v1101_v18 = vld [vmem:[%s5177_s25 + $0x60] sm:$0xff]  ;;  %v3807_v20 = vld [vmem:[%s5176_s22 + $0x18] sm:$0xff]  ;;  %v1124_v40 = vmul.f32 %v1102_v12, %v1102_v12  ;;  %v1201_v55 = vadd.s32 4294967288, %v4595_v52  ;;  %v1205_v56 = vadd.s32 4294967280, %v4595_v52 }
  0x55   : > { %1076 = vmatpush.bf16.msra.mxu0 %v3810_v1  ;;  %1131 = vadd.xlane.f32.xlu1 %v1113_v9  ;;  %v1116_v19 = vmul.f32 %v1094_v15, %v1094_v15  ;;  %v1095_v21 = vld [vmem:[%s5177_s25 + $0x30] sm:$0xff]  ;;  %v1100_v22 = vld [vmem:[%s5177_s25 + $0x58] sm:$0xff]  ;;  %v1097_v26 = vld [vmem:[%s5177_s25 + $0x40] sm:$0xff]  ;;  %v1123_v39 = vmul.f32 %v1101_v18, %v1101_v18  ;;  %v1209_v60 = vadd.s32 4294967272, %v4595_v52  ;;  %v1213_v0 = vadd.s32 4294967264, %v4595_v52 }
  0x56   : > { %1160 = vmatpush.xpose.msra.mxu1 %v4507_v4  ;;  %1135 = vadd.xlane.f32.xlu2 %v1115_v10  ;;  %v1096_v23 = vld [vmem:[%s5177_s25 + $0x38] sm:$0xff]  ;;  %v3806_v24 = vld [vmem:[%s5176_s22 + $0x10] sm:$0xff]  ;;  %v1117_v25 = vmul.f32 %v1095_v21, %v1095_v21  ;;  %v1119_v29 = vmul.f32 %v1097_v26, %v1097_v26  ;;  %v3805_v30 = vld [vmem:[%s5176_s22 + $0x8] sm:$0xff]  ;;  %v1122_v38 = vmul.f32 %v1100_v22, %v1100_v22  ;;  %v1217_v4 = vadd.s32 4294967256, %v4595_v52 }
  0x57   : > { %v1118_v27 = vmul.f32 %v1096_v23, %v1096_v23  ;;  %v1099_v28 = vld [vmem:[%s5177_s25 + $0x50] sm:$0xff]  ;;  %v1098_v31 = vld [vmem:[%s5177_s25 + $0x48] sm:$0xff]  ;;  %v3804_v32 = vld [vmem:[%s5176_s22] sm:$0xff]  ;;  %vm1231_vm7 = vcmask 589312   ;;  %vm1235_vm8 = vcmask 654912   ;;  %vm1239_vm9 = vcmask 720512  }
  0x58   : > { %v1004_v33 = vld [vmem:[%s5178_s0] sm:$0xff]  ;;  %v1005_v34 = vld [vmem:[%s5178_s0 + $0x8] sm:$0xff]  ;;  %v1120_v35 = vmul.f32 %v1098_v31, %v1098_v31  ;;  %v1121_v36 = vmul.f32 %v1099_v28, %v1099_v28  ;;  %s5179_s0 = sld [smem:[#allocation24_spill]]  ;;  %vm1243_vm10 = vcmask 786112   ;;  %vm1247_vm11 = vcmask 851712  }
  0x59   : > { %1077 = vmatpush.bf16.msra.mxu0 %v3809_v8  ;;  %v1006_v37 = vpack.c.bf16 %v1005_v34, %v1004_v33  ;;  %v1221_v8 = vadd.s32 4294967248, %v4595_v52  ;;  %vm1251_vm12 = vcmask 917312   ;;  %vm1255_vm13 = vcmask 982912  }
  0x5a   : > { %1161 = vmatpush.xpose.msra.mxu1 %v1102_v12  ;;  %v1225_v12 = vadd.s32 4294967240, %v4595_v52  ;;  %vm1259_vm14 = vcmask 1048512   ;;  %vm1280_vm15 = vcmp.lt.s32.totalorder %v4595_v52, 64 }
  0x5c   : > { %1129 = vadd.xlane.f32.xlu0 %v1112_v16  ;;  %v1229_v16 = vadd.s32 4294967232, %v4595_v52 }
  0x5d   : > { %1078 = vmatpush.bf16.msra.mxu0 %v3808_v14  ;;  %1133 = vadd.xlane.f32.xlu1 %v1114_v17 }
  0x5e   : > { %1162 = vmatpush.xpose.msra.mxu1 %v1101_v18  ;;  %1137 = vadd.xlane.f32.xlu2 %v1116_v19  ;;  %v4010_v43 = vld [vmem:[%s5179_s0] ss:$0 sm:$0xff] }
  0x61   : > { %1079 = vmatpush.bf16.msra.mxu0 %v3807_v20  ;;  %v1233_v20 = vadd.s32 4294967224, %v4595_v52 }
  0x62   : > { %1163 = vmatpush.xpose.msra.mxu1 %v1100_v22 }
  0x64   : > { %1139 = vadd.xlane.f32.xlu0 %v1117_v25 }
  0x65   : > { %1080 = vmatpush.bf16.msra.mxu0 %v3806_v24  ;;  %1141 = vadd.xlane.f32.xlu1 %v1118_v27  ;;  %v1241_v27 = vadd.s32 4294967208, %v4595_v52 }
  0x66   : > { %1164 = vmatpush.xpose.msra.mxu1 %v1099_v28  ;;  %1143 = vadd.xlane.f32.xlu2 %v1119_v29 }
  0x69   : > { %1081 = vmatpush.bf16.msra.mxu0 %v3805_v30 }
  0x6a   : > { %1165 = vmatpush.xpose.msra.mxu1 %v1098_v31  ;;  %v1245_v31 = vadd.s32 4294967200, %v4595_v52 }
  0x6c   : > { %1145 = vadd.xlane.f32.xlu0 %v1120_v35  ;;  %v1249_v35 = vadd.s32 4294967192, %v4595_v52 }
  0x6d   : > { %1082 = vmatpush.bf16.msra.mxu0 %v3804_v32  ;;  %1147 = vadd.xlane.f32.xlu1 %v1121_v36 }
  0x6e   : > { %1166 = vmatpush.xpose.msra.mxu1 %v1097_v26  ;;  %1149 = vadd.xlane.f32.xlu2 %v1122_v38 }
  0x70   : > { %1083 = vmatmul.bf16.vlgmr.msra.gmra.mxu0 %v1006_v37 }
  0x72   : > { %1167 = vmatpush.xpose.msra.mxu1 %v1096_v23  ;;  %v1237_v23 = vadd.s32 4294967216, %v4595_v52 }
  0x74   : > { %1151 = vadd.xlane.f32.xlu0 %v1123_v39  ;;  %v1253_v39 = vadd.s32 4294967184, %v4595_v52 }
  0x75   : > { %1153 = vadd.xlane.f32.xlu1 %v1124_v40 }
  0x76   : > { %1168 = vmatpush.xpose.msra.mxu1 %v1095_v21  ;;  %1155 = vadd.xlane.f32.xlu2 %v1125_v41 }
  0x7a   : > { %1169 = vmatpush.xpose.msra.mxu1 %v1094_v15 }
  0x7c   : > { %1157 = vadd.xlane.f32.xlu0 %v1126_v42 }
  0x7e   : > { %1170 = vmatpush.xpose.msra.mxu1 %v4519_v7 }
  0x82   : > { %1171 = vmatpush.xpose.msra.mxu1 %v1092_v13 }
  0x86   : > { %1172 = vmatpush.xpose.msra.mxu1 %v4514_v6 }
  0x8a   : > { %1173 = vmatpush.xpose.msra.mxu1 %v4532_v11 }
  0x8e   : > { %1174 = vmatpush.xpose.msra.mxu1 %v4502_v3 }
  0xc7   : > { %v1128_v51 = vpop.xlane.xlu0 %1127 }
  0xc8   : > { %v1132_v53 = vpop.xlane.xlu1 %1131  ;;  %v1200_v58 = vperm.slane %v1128_v51, %v4595_v52 }
  0xc9   : > { %v1136_v54 = vpop.xlane.xlu2 %1135  ;;  %v1206_v61 = vperm.slane %v1132_v53, %v1205_v56 }
  0xca   : > { %v1214_v5 = vperm.slane %v1136_v54, %v1213_v0 }
  0xcf   : > { %v1130_v57 = vpop.xlane.xlu0 %1129 }
  0xd0   : > { %v1202_v59 = vperm.slane %v1130_v57, %v1201_v55  ;;  %v1134_v62 = vpop.xlane.xlu1 %1133 }
  0xd1   : > { %v1210_v1 = vperm.slane %v1134_v62, %v1209_v60  ;;  %v1138_v2 = vpop.xlane.xlu2 %1137 }
  0xd2   : > { %v1204_v63 = vsel %vm1203_vm0, %v1202_v59, %v1200_v58  ;;  %v1218_v9 = vperm.slane %v1138_v2, %v1217_v4 }
  0xd3   : > { %v1208_v3 = vsel %vm1207_vm1, %v1206_v61, %v1204_v63 }
  0xd4   : > { %v1212_v7 = vsel %vm1211_vm2, %v1210_v1, %v1208_v3 }
  0xd5   : > { %v1216_v10 = vsel %vm1215_vm3, %v1214_v5, %v1212_v7 }
  0xd6   : > { %v1220_v14 = vsel %vm1219_vm4, %v1218_v9, %v1216_v10 }
  0xd7   : > { %v1140_v6 = vpop.xlane.xlu0 %1139 }
  0xd8   : > { %v1142_v11 = vpop.xlane.xlu1 %1141  ;;  %v1222_v13 = vperm.slane %v1140_v6, %v1221_v8 }
  0xd9   : > { %v1144_v15 = vpop.xlane.xlu2 %1143  ;;  %v1226_v17 = vperm.slane %v1142_v11, %v1225_v12 }
  0xda   : > { %v1224_v18 = vsel %vm1223_vm5, %v1222_v13, %v1220_v14  ;;  %v1230_v21 = vperm.slane %v1144_v15, %v1229_v16  ;;  %v4192_v16 = vmov 0   ;;  %vm1359_vm5 = vcmp.eq.s32.totalorder %v4595_v52, 64 }
  0xdb   : > { %v1228_v22 = vsel %vm1227_vm6, %v1226_v17, %v1224_v18  ;;  %4008 = vset.pattern.permute.xlu0 %v4192_v16  ;;  %4009 = vset.pattern.permute.xlu1 %v4192_v16  ;;  %v1321_v17 = vld [vmem:[%s4413_s23] sm:$0xff] }
  0xdc   : > { %v1232_v26 = vsel %vm1231_vm7, %v1230_v21, %v1228_v22  ;;  %v1323_v21 = vld [vmem:[%s4418_s21] sm:$0xff] }
  0xdf   : > { %v1146_v19 = vpop.xlane.xlu0 %1145 }
  0xe0   : > { %v1148_v24 = vpop.xlane.xlu1 %1147  ;;  %v1234_v25 = vperm.slane %v1146_v19, %v1233_v20  ;;  %v1327_v19 = vsub.s32 1, %v1321_v17 }
  0xe1   : > { %v1150_v28 = vpop.xlane.xlu2 %1149  ;;  %v1238_v29 = vperm.slane %v1148_v24, %v1237_v23 }
  0xe2   : > { %v1236_v30 = vsel %vm1235_vm8, %v1234_v25, %v1232_v26  ;;  %v1242_v33 = vperm.slane %v1150_v28, %v1241_v27  ;;  %v1329_v25 = vmul.u32 %v1327_v19, %v1323_v21  ;;  %v1322_v26 = vld [vmem:[%s4413_s23 + $0x8] sm:$0xff] }
  0xe3   : > { %v1240_v34 = vsel %vm1239_vm9, %v1238_v29, %v1236_v30  ;;  %v1328_v29 = vsub.s32 1, %v1322_v26 }
  0xe4   : > { %v1244_v38 = vsel %vm1243_vm10, %v1242_v33, %v1240_v34 }
  0xe7   : > { %v1152_v32 = vpop.xlane.xlu0 %1151 }
  0xe8   : > { %v1246_v36 = vperm.slane %v1152_v32, %v1245_v31  ;;  %v1154_v37 = vpop.xlane.xlu1 %1153  ;;  %v1324_v32 = vld [vmem:[%s4418_s21 + $0x8] sm:$0xff] }
  0xe9   : > { %v1250_v40 = vperm.slane %v1154_v37, %v1249_v35  ;;  %v1156_v41 = vpop.xlane.xlu2 %1155 }
  0xea   : > { %v1248_v42 = vsel %vm1247_vm11, %v1246_v36, %v1244_v38  ;;  %v1330_v36 = vmul.u32 %v1328_v29, %v1324_v32 }
  0xed   : > { %v1084_v44 = vpop.f32.mrf.mxu0 }
  0xee   : > { %v1085_v45 = vadd.f32 %v4010_v43, %v1084_v44  ;;  %v1254_v44 = vperm.slane %v1156_v41, %v1253_v39  ;;  %v1334_v39 = vshrl.u32 %v1198_v50, 7  ;;  %v3818_v41 = vld [vmem:[%s5180_s7 + $0x30] sm:$0xff]  ;;  %v3817_v50 = vld [vmem:[%s5180_s7 + $0x28] sm:$0xff] }
  0xf0   : > { %1175 = vmatmul.f32.vlgmr.msra.gmra.mxu1 %v1085_v45  ;;  %v1105_v46 = vmul.f32 %v1085_v45, %v1085_v45  ;;  %v1158_v45 = vpop.xlane.xlu0 %1157  ;;  %vm1357_vm4 = vcmp.eq.s32.totalorder %v1334_v39, 0 }
  0xf1   : > { %vm1360_vm6 = vmand %vm1357_vm4, %vm1359_vm5 }
  0xf2   : > { %1107 = vadd.xlane.f32.xlu1 %v1105_v46  ;;  %v1252_v46 = vsel %vm1251_vm12, %v1250_v40, %v1248_v42  ;;  %v3819_v40 = vld [vmem:[%s5180_s7 + $0x38] sm:$0xff]  ;;  %v4193_v42 = vmov 0.0   ;;  %vm1366_vm12 = vcmask 130048  }
  0xf3   : > { %1451 = vmatpush.bf16.msra.mxu3 %v3819_v40 }
  0xf5   : > { %v1086_v47 = vpop.f32.mrf.mxu0 }
  0xf6   : > { %v1087_v48 = vadd.f32 %v4010_v43, %v1086_v47  ;;  %v1257_v43 = vadd.s32 4294967176, %v4595_v52 }
  0xf7   : > { %1452 = vmatpush.bf16.msra.mxu3 %v3818_v41 }
  0xf8   : > { %1178 = vmatmul.f32.gmra.mxu1 %v1087_v48  ;;  %v1106_v49 = vmul.f32 %v1087_v48, %v1087_v48  ;;  %v1258_v47 = vperm.slane %v1158_v45, %v1257_v43  ;;  %v1256_v48 = vsel %vm1255_vm13, %v1254_v44, %v1252_v46  ;;  %v3331_v43 = vsel %vm1360_vm6, 1.0, %v4193_v42  ;;  %v3816_v44 = vld [vmem:[%s5180_s7 + $0x20] sm:$0xff]  ;;  %v3815_v45 = vld [vmem:[%s5180_s7 + $0x18] sm:$0xff] }
  0xf9   : > { %v1335_v46 = vadd.s32 8, %v1334_v39 }
  0xfa   : > { %1109 = vadd.xlane.f32.xlu2 %v1106_v49  ;;  %v1260_v51 = vsel %vm1259_vm14, %v1258_v47, %v1256_v48  ;;  %v1349_v47 = vadd.s32 1, %v4595_v52 }
  0xfb   : > { %1453 = vmatpush.bf16.msra.mxu3 %v3817_v50 }
  0xfc   : > { %vm1350_vm7 = vcmp.eq.s32.totalorder %v1334_v39, %v1349_v47  ;;  %vm1351_vm8 = vcmp.eq.s32.totalorder %v1335_v46, %v1349_v47 }
  0xff   : > { %1454 = vmatpush.bf16.msra.mxu3 %v3816_v44 }
 0x103   : > { %1455 = vmatpush.bf16.msra.mxu3 %v3815_v45 }
 0x165   : > { %v1108_v49 = vpop.xlane.xlu1 %1107 }
 0x166   : > { %v1274_v54 = vadd.f32 %v1260_v51, %v1108_v49  ;;  %v3329_v49 = vsel %vm1350_vm7, 1.0, %v4193_v42 }
 0x16d   : > { %v1176_v53 = vpop.f32.mrf.mxu1  ;;  %v1110_v58 = vpop.xlane.xlu2 %1109 }
 0x16e   : > { %v1276_v55 = vmul.f32 2.0, %v1176_v53  ;;  %v1275_v60 = vadd.f32 %v1260_v51, %v1110_v58  ;;  %v3330_v51 = vsel %vm1351_vm8, 1.0, %v4193_v42 }
 0x170   : > { %v1278_v56 = vsub.f32 %v1274_v54, %v1276_v55  ;;  %v1356_v54 = vpack.c.bf16 %v3330_v51, %v3329_v49  ;;  %v4194_v55 = vmov 1.0|1.0  }
 0x172   : > { %v1281_v57 = vsel %vm1280_vm15, %v1278_v56, 1e+30  ;;  %v3814_v56 = vld [vmem:[%s5180_s7 + $0x10] sm:$0xff] }
 0x173   : > { %1283 = vmin.xlane.f32.xlu0 %v1281_v57  ;;  %1456 = vmatpush.bf16.msra.mxu3 %v3814_v56 }
 0x175   : > { %v1179_v59 = vpop.f32.mrf.mxu1 }
 0x176   : > { %v1277_v61 = vmul.f32 2.0, %v1179_v59 }
 0x178   : > { %v1279_v62 = vsub.f32 %v1275_v60, %v1277_v61 }
 0x17a   : > { %v1282_v63 = vsel %vm1280_vm15, %v1279_v62, 1e+30  ;;  %v1401_v62 = vld [vmem:[%s5181_s29] sm:$0xff] }
 0x17b   : > { %1285 = vmin.xlane.f32.xlu1 %v1282_v63 }
 0x1e6   : > { %v1284_v0 = vpop.xlane.xlu0 %1283 }
 0x1e7   : > { %vm1287_vm0 = vcmp.le.f32.partialorder %v1281_v57, %v1284_v0  ;;  %v3813_v57 = vld [vmem:[%s5180_s7 + $0x8] sm:$0xff] }
 0x1e8   : > { %v1289_v1 = vsel %vm1287_vm0, %v4595_v52, 128  ;;  %1457 = vmatpush.bf16.msra.mxu3 %v3813_v57 }
 0x1e9   : > { %v1292_v2 = vshra.s32 %v1289_v1, 16  ;;  %v1291_v8 = vand.u32 65535, %v1289_v1 }
 0x1eb   : > { %v1294_v3 = vcvt.s32.f32 %v1292_v2  ;;  %v1293_v10 = vcvt.s32.f32 %v1291_v8 }
 0x1ed   : > { %1295 = vmin.xlane.f32.xlu2 %v1294_v3 }
 0x1ee   : > { %v1286_v4 = vpop.xlane.xlu1 %1285 }
 0x1ef   : > { %vm1288_vm1 = vcmp.le.f32.partialorder %v1282_v63, %v1286_v4 }
 0x1f0   : > { %v1290_v5 = vsel %vm1288_vm1, %v4595_v52, 128 }
 0x1f1   : > { %v1306_v6 = vshra.s32 %v1290_v5, 16  ;;  %v1305_v12 = vand.u32 65535, %v1290_v5 }
 0x1f3   : > { %v1308_v7 = vcvt.s32.f32 %v1306_v6  ;;  %v1307_v14 = vcvt.s32.f32 %v1305_v12 }
 0x1f5   : > { %1309 = vmin.xlane.f32.xlu0 %v1308_v7 }
 0x260   : > { %v1296_v9 = vpop.xlane.xlu2 %1295 }
 0x261   : > { %vm1297_vm2 = vcmp.eq.f32.partialorder %v1294_v3, %v1296_v9  ;;  %v1302_v18 = vcvt.f32.s32 %v1296_v9 }
 0x262   : > { %v1298_v11 = vsel %vm1297_vm2, %v1293_v10, inf }
 0x263   : > { %1299 = vmin.xlane.f32.xlu1 %v1298_v11  ;;  %v1303_v22 = vshll.u32 %v1302_v18, 16 }
 0x268   : > { %v1310_v13 = vpop.xlane.xlu0 %1309 }
 0x269   : > { %vm1311_vm3 = vcmp.eq.f32.partialorder %v1308_v7, %v1310_v13  ;;  %v1316_v27 = vcvt.f32.s32 %v1310_v13 }
 0x26a   : > { %v1312_v15 = vsel %vm1311_vm3, %v1307_v14, inf }
 0x26b   : > { %1313 = vmin.xlane.f32.xlu2 %v1312_v15  ;;  %v1317_v33 = vshll.u32 %v1316_v27, 16 }
 0x2d6   : > { %v1300_v20 = vpop.xlane.xlu1 %1299 }
 0x2d7   : > { %v1301_v23 = vcvt.f32.s32 %v1300_v20 }
 0x2d9   : > { %v1304_v24 = vadd.s32 %v1303_v22, %v1301_v23 }
 0x2db   : > { %1319 = vst [vmem:[%s4482_s12] sm:$0xff] %v1304_v24  ;;  %v1325_v28 = vmul.u32 %v1321_v17, %v1304_v24 }
 0x2dd   : > { %v1331_v30 = vadd.s32 %v1329_v25, %v1325_v28 }
 0x2de   : > { %v1314_v31 = vpop.xlane.xlu2 %1313 }
 0x2df   : > { %v1315_v34 = vcvt.f32.s32 %v1314_v31  ;;  %1337 = vperm.xlu0 %4008, %v1331_v30  }
 0x2e1   : > { %v1318_v35 = vadd.s32 %v1317_v33, %v1315_v34 }
 0x2e3   : > { %1320 = vst [vmem:[%s4482_s12 + $0x8] sm:$0xff] %v1318_v35  ;;  %v1326_v37 = vmul.u32 %v1322_v26, %v1318_v35  ;;  %s5182_s12 = smov %s5181_s29 }
 0x2e4   : > { %v1402_v1 = vld [vmem:[%s5182_s12 + $0x8] sm:$0xff] }
 0x2e5   : > { %v1332_v38 = vadd.s32 %v1330_v36, %v1326_v37 }
 0x2e7   : > { %1340 = vperm.xlu1 %4009, %v1332_v38  }
 0x351   : > { %v1338_v48 = vpop.permute.xlu0 %1337 }
 0x352   : > { %vm1342_vm9 = vcmp.eq.s32.totalorder %v4595_v52, %v1338_v48 }
 0x359   : > { %v1341_v53 = vpop.permute.xlu1 %1340 }
 0x35a   : > { %vm1343_vm10 = vcmp.eq.s32.totalorder %v4595_v52, %v1341_v53  ;;  %v3812_v52 = vld [vmem:[%s5180_s7] sm:$0xff] }
 0x35b   : > { %vm3332_vm11 = vmpackc.low %vm1343_vm10, %vm1342_vm9  ;;  %1458 = vmatpush.bf16.msra.mxu3 %v3812_v52 }
 0x35c   : > { %3333 = vmatpush.bf16.msk.msra.mxu2 %vm3332_vm11, %v4194_v55 }
 0x35f   : > { %3334 = vmatmul.msk.bf16.vlgmr.msra.gmra.mxu2 %vm1366_vm12, %v1356_v54 }
 0x3e2   : > { %v1379_v58 = vpop.f32.mrf.mxu2 }
 0x3e3   : > { %v1380_v59 = vadd.f32 %v3331_v43, %v1379_v58 }
 0x3ea   : > { %v1381_v60 = vpop.f32.mrf.mxu2 }
 0x3eb   : > { %v1384_v61 = vpack.c.bf16 %v1381_v60, %v1380_v59 }
 0x3ed   : > { %1459 = vmatmul.bf16.vlgmr.msra.gmra.mxu3 %v1384_v61 }
 0x470   : > { %v1460_v63 = vpop.f32.mrf.mxu3 }
 0x471   : > { %v1461_v0 = vadd.f32 %v1460_v63, %v1401_v62 }
 0x473   : > { %1465 = vst [vmem:[#allocation2] sm:$0xff] %v1461_v0 }
 0x478   : > { %v1462_v2 = vpop.f32.mrf.mxu3 }
 0x479   : > { %v1463_v3 = vadd.f32 %v1462_v2, %v1402_v1 }
 0x47b   : > { %1466 = vst [vmem:[#allocation2 + $0x8] sm:$0xff] %v1463_v3 }
 0x47c PF: > { %v4657_v4 = vld [vmem:[#allocation2] sm:$0xff]  ;;  %v4195_v6 = vmov 128.0   ;;  %v3453_v21 = vld [vmem:[%s4434_s30 + $0xa8] sm:$0xf]  ;;  %v3842_v22 = vld [vmem:[%s4434_s30 + $0xb0] sm:$0xf0]  ;;  %s5187_s21 = scalar_lea.vmem %s5093_s13, %s4403_s4  ;;  %s5188_s26 = scalar_lea.vmem %s5094_s14, %s4403_s4 }
 0x47d   : > { %1480 = vadd.xlane.f32.xlu0 %v4657_v4  ;;  %4032 = vrcp.f32 %v4195_v6  ;;  %v3841_v23 = vld [vmem:[%s4434_s30 + $0xac] sm:$0xf]  ;;  %v3454_v24 = vor.u32 %v3842_v22, %v3453_v21  ;;  %v3455_v25 = vld [vmem:[%s4434_s30 + $0xb4] sm:$0xf0]  ;;  %v3461_v26 = vld [vmem:[%s4434_s30 + $0xb0] sm:$0xf] }
 0x47e   : > { %v3843_v27 = vld [vmem:[%s4434_s30 + $0xb8] sm:$0xf0]  ;;  %v3458_v28 = vor.u32 %v3841_v23, %v3455_v25  ;;  %v3441_v30 = vld [vmem:[%s4434_s30 + $0x90] sm:$0xf]  ;;  %v3838_v32 = vld [vmem:[%s4434_s30 + $0x94] sm:$0xf] }
 0x47f   : > { %v3462_v29 = vor.u32 %v3843_v27, %v3461_v26  ;;  %1706 = vmatpush.bf16.msra.mxu0 %v3454_v24  ;;  %v3839_v31 = vld [vmem:[%s4434_s30 + $0x98] sm:$0xf0]  ;;  %v3443_v34 = vld [vmem:[%s4434_s30 + $0x9c] sm:$0xf0]  ;;  %v3449_v35 = vld [vmem:[%s4434_s30 + $0x98] sm:$0xf] }
 0x480   : > { %1720 = vmatpush.bf16.msra.mxu1 %v3458_v28  ;;  %v3442_v33 = vor.u32 %v3839_v31, %v3441_v30  ;;  %v3840_v36 = vld [vmem:[%s4434_s30 + $0xa0] sm:$0xf0]  ;;  %v3446_v37 = vor.u32 %v3838_v32, %v3443_v34  ;;  %v3429_v39 = vld [vmem:[%s4434_s30 + $0x78] sm:$0xf]  ;;  %v3835_v41 = vld [vmem:[%s4434_s30 + $0x7c] sm:$0xf] }
 0x481   : > { %1734 = vmatpush.bf16.msra.mxu2 %v3462_v29  ;;  %v3450_v38 = vor.u32 %v3840_v36, %v3449_v35  ;;  %v3836_v40 = vld [vmem:[%s4434_s30 + $0x80] sm:$0xf0]  ;;  %v3431_v43 = vld [vmem:[%s4434_s30 + $0x84] sm:$0xf0]  ;;  %v3437_v50 = vld [vmem:[%s4434_s30 + $0x80] sm:$0xf] }
 0x482   : > { %v4660_v5 = vld [vmem:[#allocation2 + $0x8] sm:$0xff]  ;;  %v3430_v42 = vor.u32 %v3836_v40, %v3429_v39  ;;  %v3434_v45 = vor.u32 %v3835_v41, %v3431_v43  ;;  %v3417_v47 = vld [vmem:[%s4434_s30 + $0x60] sm:$0xf]  ;;  %v3832_v49 = vld [vmem:[%s4434_s30 + $0x64] sm:$0xf]  ;;  %s5183_s11 = sld [smem:[#allocation28_spill]] }
 0x483   : > { %v4033_v7 = vpop.eup %4032  ;;  %1707 = vmatpush.bf16.msra.mxu0 %v3442_v33  ;;  %v3837_v44 = vld [vmem:[%s4434_s30 + $0x88] sm:$0xf0]  ;;  %v3419_v53 = vld [vmem:[%s4434_s30 + $0x6c] sm:$0xf0]  ;;  %v3425_v54 = vld [vmem:[%s4434_s30 + $0x68] sm:$0xf] }
 0x484   : > { %v1485_v8 = vmul.f32 128.0, %v4033_v7  ;;  %vm1489_vm13 = vweird.f32 %v4033_v7  ;;  %1721 = vmatpush.bf16.msra.mxu1 %v3446_v37  ;;  %v3438_v46 = vor.u32 %v3837_v44, %v3437_v50  ;;  %v3833_v48 = vld [vmem:[%s4434_s30 + $0x68] sm:$0xf0]  ;;  %v3834_v55 = vld [vmem:[%s4434_s30 + $0x70] sm:$0xf0]  ;;  %v3422_v56 = vor.u32 %v3832_v49, %v3419_v53  ;;  %s5185_s1 = sld [smem:[#allocation29_spill]] }
 0x485   : > { %1482 = vadd.xlane.f32.xlu0 %v4660_v5  ;;  %1735 = vmatpush.bf16.msra.mxu2 %v3450_v38  ;;  %v3418_v51 = vor.u32 %v3833_v48, %v3417_v47  ;;  %v3426_v57 = vor.u32 %v3834_v55, %v3425_v54  ;;  %v3405_v52 = vld [vmem:[%s4434_s30 + $0x48] sm:$0xf]  ;;  %v3830_v58 = vld [vmem:[%s4434_s30 + $0x50] sm:$0xf0]  ;;  %v3829_v59 = vld [vmem:[%s4434_s30 + $0x4c] sm:$0xf] }
 0x486   : > { %v1486_v9 = vsub.f32 1.0, %v1485_v8  ;;  %v3406_v60 = vor.u32 %v3830_v58, %v3405_v52  ;;  %v3407_v61 = vld [vmem:[%s4434_s30 + $0x54] sm:$0xf0]  ;;  %v3413_v62 = vld [vmem:[%s4434_s30 + $0x50] sm:$0xf]  ;;  %vm1766_vm4 = vcmask 261120  }
 0x487   : > { %1708 = vmatpush.bf16.msra.mxu0 %v3430_v42  ;;  %v3831_v63 = vld [vmem:[%s4434_s30 + $0x58] sm:$0xf0]  ;;  %v3410_v0 = vor.u32 %v3829_v59, %v3407_v61  ;;  %v3393_v2 = vld [vmem:[%s4434_s30 + $0x30] sm:$0xf]  ;;  %v3826_v6 = vld [vmem:[%s4434_s30 + $0x34] sm:$0xf] }
 0x488   : > { %v1487_v10 = vmul.f32 %v4033_v7, %v1486_v9  ;;  %1722 = vmatpush.bf16.msra.mxu1 %v3434_v45  ;;  %v3414_v1 = vor.u32 %v3831_v63, %v3413_v62  ;;  %v3827_v3 = vld [vmem:[%s4434_s30 + $0x38] sm:$0xf0]  ;;  %v3395_v8 = vld [vmem:[%s4434_s30 + $0x3c] sm:$0xf0]  ;;  %v3401_v9 = vld [vmem:[%s4434_s30 + $0x38] sm:$0xf]  ;;  %s5184_s15 = scalar_lea.vmem %s5183_s11, %s4403_s4 }
 0x489   : > { %1736 = vmatpush.bf16.msra.mxu2 %v3438_v46  ;;  %v3389_v21 = vld [vmem:[%s4434_s30 + $0x20] sm:$0xf]  ;;  %v3825_v22 = vld [vmem:[%s4434_s30 + $0x28] sm:$0xf0]  ;;  %v3820_v27 = vld [vmem:[%s4434_s30 + $0x4] sm:$0xf] }
 0x48a   : > { %v1488_v11 = vadd.f32 %v4033_v7, %v1487_v10  ;;  %v3828_v10 = vld [vmem:[%s4434_s30 + $0x40] sm:$0xf0]  ;;  %v3390_v24 = vor.u32 %v3825_v22, %v3389_v21  ;;  %v3369_v25 = vld [vmem:[%s4434_s30] sm:$0xf]  ;;  %v3821_v26 = vld [vmem:[%s4434_s30 + $0x8] sm:$0xf0]  ;;  %s5186_s27 = scalar_lea.vmem %s5185_s1, %s4403_s4 }
 0x48b   : > { %1709 = vmatpush.bf16.msra.mxu0 %v3418_v51  ;;  %v3370_v29 = vor.u32 %v3821_v26, %v3369_v25  ;;  %v3371_v30 = vld [vmem:[%s4434_s30 + $0xc] sm:$0xf0]  ;;  %v3377_v31 = vld [vmem:[%s4434_s30 + $0x8] sm:$0xf]  ;;  %v3822_v32 = vld [vmem:[%s4434_s30 + $0x10] sm:$0xf0] }
 0x48c   : > { %v4663_v12 = vsel %vm1489_vm13, %v4033_v7, %v1488_v11  ;;  %1723 = vmatpush.bf16.msra.mxu1 %v3422_v56  ;;  %v3394_v7 = vor.u32 %v3827_v3, %v3393_v2  ;;  %v3398_v11 = vor.u32 %v3826_v6, %v3395_v8  ;;  %v3374_v34 = vor.u32 %v3820_v27, %v3371_v30  ;;  %v4026_v54 = vld [vmem:[%s5184_s15] ss:$0 sm:$0xff]  ;;  %s4198_s0 = smov 32   ;;  %s4199_s3 = smov 64  }
 0x48d   : > { %1737 = vmatpush.bf16.msra.mxu2 %v3426_v57  ;;  %v3378_v35 = vor.u32 %v3822_v32, %v3377_v31  ;;  %v4027_v58 = vld [vmem:[%s5186_s27] ss:$0 sm:$0xff]  ;;  %vm1787_vm6 = vcmask 130048   ;;  %vm2061_vm8 = vcmask 523264   ;;  %vm2064_vm9 = vcmask 785408   ;;  %s5189_s5 = sld [smem:[#allocation33_spill]] }
 0x48e   : > { %v1570_v62 = vld [vmem:[%s4444_s28] sm:$0x7]  ;;  %s4196_s28 = smov 96   ;;  %s5192_s16 = sld [smem:[#allocation9_spill]] }
 0x48f   : > { %1710 = vmatpush.bf16.msra.mxu0 %v3406_v60  ;;  %v1572_v63 = vperm.slane %v1570_v62, 0  ;;  %v1573_v2 = vperm.slane %v1570_v62, 1  ;;  %v1574_v8 = vperm.slane %v1570_v62, 2 }
 0x490   : > { %1724 = vmatpush.bf16.msra.mxu1 %v3410_v0 }
 0x491   : > { %1738 = vmatpush.bf16.msra.mxu2 %v3414_v1 }
 0x493   : > { %1711 = vmatpush.bf16.msra.mxu0 %v3394_v7  ;;  %s5190_s11 = scalar_lea.vmem %s5189_s5, %s4403_s4 }
 0x494   : > { %1725 = vmatpush.bf16.msra.mxu1 %v3398_v11  ;;  %p3759_p1 = scmp.ne.s32.totalorder %s5192_s16, 1 }
 0x495   : > { %s5193_s2 = sld [smem:[#allocation38_spill]] (!%p3759_p1) }
 0x496   : > { %s5195_s15 = sld [smem:[#allocation36_spill]] (!%p3759_p1) }
 0x497   : > { %s5196_s4 = sld [smem:[#allocation37_spill]] (!%p3759_p1) }
 0x49b   : > { %s5194_s1 = smov (!%p3759_p1), %s5193_s2 }
 0x4f0   : > { %v1481_v13 = vpop.xlane.xlu0 %1480 }
 0x4f1   : > { %v1491_v14 = vmul.f32 %v4663_v12, %v1481_v13  ;;  %v3402_v13 = vor.u32 %v3828_v10, %v3401_v9 }
 0x4f3   : > { %v4667_v15 = vsub.f32 %v4657_v4, %v1491_v14  ;;  %1739 = vmatpush.bf16.msra.mxu2 %v3402_v13  ;;  %v3381_v14 = vld [vmem:[%s4434_s30 + $0x18] sm:$0xf] }
 0x4f5   : > { %v1495_v16 = vmul.f32 %v4667_v15, %v4667_v15 }
 0x4f7   : > { %1497 = vadd.xlane.f32.xlu1 %v1495_v16  ;;  %v3824_v16 = vld [vmem:[%s4434_s30 + $0x20] sm:$0xf0]  ;;  %1740 = vmatpush.bf16.msra.mxu2 %v3390_v24 }
 0x4f8   : > { %v1483_v17 = vpop.xlane.xlu0 %1482 }
 0x4f9   : > { %v1492_v18 = vmul.f32 %v4663_v12, %v1483_v17  ;;  %v3823_v17 = vld [vmem:[%s4434_s30 + $0x1c] sm:$0xf] }
 0x4fb   : > { %v4673_v19 = vsub.f32 %v4660_v5, %v1492_v18  ;;  %v3382_v18 = vor.u32 %v3824_v16, %v3381_v14  ;;  %1741 = vmatpush.bf16.msra.mxu2 %v3378_v35 }
 0x4fd   : > { %v1496_v20 = vmul.f32 %v4673_v19, %v4673_v19  ;;  %1712 = vmatpush.bf16.msra.mxu0 %v3382_v18 }
 0x4ff   : > { %1499 = vadd.xlane.f32.xlu1 %v1496_v20  ;;  %v3383_v20 = vld [vmem:[%s4434_s30 + $0x24] sm:$0xf0] }
 0x500   : > { %v3386_v23 = vor.u32 %v3823_v17, %v3383_v20 }
 0x501   : > { %1713 = vmatpush.bf16.msra.mxu0 %v3370_v29 }
 0x502   : > { %1726 = vmatpush.bf16.msra.mxu1 %v3386_v23 }
 0x506   : > { %1727 = vmatpush.bf16.msra.mxu1 %v3374_v34 }
 0x56a   : > { %v1498_v28 = vpop.xlane.xlu1 %1497 }
 0x56b   : > { %v1501_v33 = vmul.f32 %v1498_v28, %v4663_v12 }
 0x56d   : > { %v1503_v36 = vadd.f32 1e-05, %v1501_v33 }
 0x56f   : > { %4034 = vrsqrt.f32 %v1503_v36  ;;  %vm1511_vm15 = vweird.f32 %v1503_v36 }
 0x572   : > { %v1500_v37 = vpop.xlane.xlu1 %1499 }
 0x573   : > { %v1502_v38 = vmul.f32 %v1500_v37, %v4663_v12 }
 0x575   : > { %v4035_v39 = vpop.eup %4034  ;;  %v1504_v40 = vadd.f32 1e-05, %v1502_v38 }
 0x576   : > { %v1506_v41 = vmul.f32 %v4035_v39, %v1503_v36  ;;  %vm1512_vm14 = vweird.f32 %v4035_v39  ;;  %v1469_v36 = vlaneseq }
 0x577   : > { %4036 = vrsqrt.f32 %v1504_v40  ;;  %vm1513_vm0 = vmor %vm1511_vm15, %vm1512_vm14  ;;  %vm1521_vm2 = vweird.f32 %v1504_v40 }
 0x578   : > { %v1507_v42 = vmul.f32 %v4035_v39, %v1506_v41  ;;  %v1470_v37 = vshrl.u32 %v1469_v36, 7  ;;  %v1473_v38 = vand.u32 127, %v1469_v36 }
 0x57a   : > { %v1508_v43 = vmul.f32 0.5, %v1507_v42  ;;  %vm1474_vm5 = vcmp.ge.s32.totalorder %v1470_v37, %v1473_v38  ;;  %v1471_v41 = vadd.s32 8, %v1470_v37 }
 0x57c   : > { %v1509_v50 = vsub.f32 1.5, %v1508_v43  ;;  %vm1475_vm7 = vcmp.ge.s32.totalorder %v1471_v41, %v1473_v38 }
 0x57d   : > { %v4037_v44 = vpop.eup %4036 }
 0x57e   : > { %v1510_v45 = vmul.f32 %v4035_v39, %v1509_v50  ;;  %v1516_v46 = vmul.f32 %v4037_v44, %v1504_v40  ;;  %vm1522_vm1 = vweird.f32 %v4037_v44 }
 0x57f   : > { %vm1523_vm3 = vmor %vm1521_vm2, %vm1522_vm1 }
 0x580   : > { %v1517_v47 = vmul.f32 %v4037_v44, %v1516_v46  ;;  %v1514_v48 = vsel %vm1513_vm0, %v4035_v39, %v1510_v45  ;;  %v4197_v39 = vmov -1e+30  }
 0x581   : > { %v1525_v53 = vmul.f32 %v1514_v48, %v4667_v15  ;;  %v4746_v40 = vsel %vm1474_vm5, 0.0, %v4197_v39 }
 0x582   : > { %v1518_v49 = vmul.f32 0.5, %v1517_v47 }
 0x583   : > { %v1530_v52 = vmul.f32 %v4026_v54, %v1525_v53 }
 0x584   : > { %v1519_v51 = vsub.f32 1.5, %v1518_v49 }
 0x585   : > { %v1535_v15 = vadd.f32 %v4027_v58, %v1530_v52 }
 0x586   : > { %v1520_v55 = vmul.f32 %v4037_v44, %v1519_v51 }
 0x588   : > { %v1524_v56 = vsel %vm1523_vm3, %v4037_v44, %v1520_v55  ;;  %v4750_v44 = vsel %vm1475_vm7, 0.0, %v4197_v39 }
 0x589   : > { %v1526_v57 = vmul.f32 %v1524_v56, %v4673_v19 }
 0x58b   : > { %v1531_v59 = vmul.f32 %v4026_v54, %v1526_v57 }
 0x58d   : > { %v1536_v60 = vadd.f32 %v4027_v58, %v1531_v59 }
 0x58f   : > { %v1537_v61 = vpack.c.bf16 %v1536_v60, %v1535_v15 }
 0x591   : > { %1714 = vmatmul.bf16.vlgmr.msra.gmra.mxu0 %v1537_v61  ;;  %1728 = vmatmul.bf16.vlgmr.msra.gmra.mxu1 %v1537_v61 }
 0x592   : > { %1742 = vmatmul.bf16.vlgmr.msra.gmra.mxu2 %v1537_v61 }
 0x60e   : > { %v1715_v0 = vpop.f32.mrf.mxu0  ;;  %v1729_v1 = vpop.f32.mrf.mxu1 }
 0x60f   : > { %v1716_v3 = vadd.f32 %v1715_v0, %v1572_v63  ;;  %v1730_v19 = vadd.f32 %v1729_v1, %v1573_v2 }
 0x611   : > { %v1748_v6 = vmul.f32 0.17677669, %v1716_v3  ;;  %v1752_v11 = vpack.c.bf16 %v1730_v19, %v1730_v19 }
 0x613   : > { %v1750_v16 = vpack.c.bf16 %v1748_v6, %v1748_v6  ;;  %v1763_v21 = vunpack.c.l.b16 %v1752_v11 }
 0x615   : > { %v1743_v7 = vpop.f32.mrf.mxu2  ;;  %v1758_v24 = vunpack.c.l.b16 %v1750_v16 }
 0x616   : > { %v1717_v9 = vpop.f32.mrf.mxu0  ;;  %v1731_v10 = vpop.f32.mrf.mxu1  ;;  %v1744_v20 = vadd.f32 %v1743_v7, %v1574_v8 }
 0x617   : > { %v1718_v13 = vadd.f32 %v1717_v9, %v1572_v63  ;;  %v1732_v14 = vadd.f32 %v1731_v10, %v1573_v2 }
 0x618   : > { %v1754_v28 = vpack.c.bf16 %v1744_v20, %v1744_v20 }
 0x619   : > { %v1749_v17 = vmul.f32 0.17677669, %v1718_v13  ;;  %v1753_v18 = vpack.c.bf16 %v1732_v14, %v1732_v14 }
 0x61a   : > { %v1813_v33 = vunpack.c.l.b16 %v1754_v28 }
 0x61b   : > { %v1751_v22 = vpack.c.bf16 %v1749_v17, %v1749_v17  ;;  %v1764_v23 = vunpack.c.l.b16 %v1753_v18 }
 0x61d   : > { %v1759_v25 = vunpack.c.l.b16 %v1751_v22  ;;  %v1765_v26 = vpack.c.b16 %v1764_v23, %v1763_v21  ;;  %v1745_v27 = vpop.f32.mrf.mxu2 }
 0x61e   : > { %v1746_v29 = vadd.f32 %v1745_v27, %v1574_v8 }
 0x61f   : > { %v1760_v30 = vpack.c.b16 %v1759_v25, %v1758_v24  ;;  %v1771_v31 = vsel %vm1766_vm4, %v1765_v26, 0 }
 0x620   : > { %v1755_v32 = vpack.c.bf16 %v1746_v29, %v1746_v29  ;;  %1780 = vmatpush.bf16.xpose.msra.mxu3 %v1771_v31 }
 0x621   : > { %1834 = vrot.lane.b32.xlu0 %v1760_v30, %s4196_s28 }
 0x622   : > { %v1814_v34 = vunpack.c.l.b16 %v1755_v32 }
 0x624   : > { %v4742_v35 = vpack.c.b16 %v1814_v34, %v1813_v33 }
 0x627   : > { %3463 = vmatmul.msk.bf16.vlgmr.msra.gmra.mxu3 %vm1766_vm4, %v1760_v30 }
 0x628   : > { %1827 = vmatpush.bf16.msrb.mxu3 %v4742_v35 }
 0x693   : > { %v1835_v60 = vpop.permute.xlu0 %1834 }
 0x6aa   : > { %v1782_v42 = vpop.f32.mrf.mxu3 }
 0x6ab   : > { %v1783_v43 = vadd.f32 %v1782_v42, %v4746_v40 }
 0x6ad   : > { %v1788_v50 = vsel %vm1787_vm6, %v1783_v43, -inf }
 0x6ae   : > { %1789 = vmax.xlane.f32.xlu2 %v1788_v50 }
 0x6b2   : > { %v1784_v45 = vpop.f32.mrf.mxu3 }
 0x6b3   : > { %v1785_v46 = vadd.f32 %v1784_v45, %v4750_v44 }
 0x6b5   : > { %v1791_v47 = vsel %vm1787_vm6, %v1785_v46, -inf }
 0x6b6   : > { %1792 = vmax.xlane.f32.xlu2 %v1791_v47 }
 0x6ce   : > { %1836 = vrot.lane.b32.xlu2 %v1765_v26, %s4196_s28 }
 0x6d6   : > { %1970 = vrot.lane.b32.xlu2 %v1765_v26, %s4198_s0 }
 0x6de   : > { %1968 = vrot.lane.b32.xlu2 %v1760_v30, %s4198_s0 }
 0x721   : > { %v1790_v48 = vpop.xlane.xlu2 %1789 }
 0x722   : > { %v1794_v49 = vsub.f32 %v1783_v43, %v1790_v48 }
 0x724   : > { %v1796_v51 = vmul.f32 1.442695, %v1794_v49 }
 0x726   : > { %4038 = vpow2.f32 %v1796_v51 }
 0x729   : > { %v1793_v53 = vpop.xlane.xlu2 %1792 }
 0x72a   : > { %v1795_v54 = vsub.f32 %v1785_v46, %v1793_v53 }
 0x72c   : > { %v4039_v55 = vpop.eup %4038  ;;  %v1798_v56 = vmul.f32 1.442695, %v1795_v54 }
 0x72d   : > { %v1800_v57 = vsel %vm1787_vm6, %v4039_v55, 0.0 }
 0x72e   : > { %4040 = vpow2.f32 %v1798_v56  ;;  %1801 = vadd.xlane.f32.xlu0 %v1800_v57 }
 0x731   : > { %v1837_v52 = vpop.permute.xlu2 %1836 }
 0x732   : > { %v1842_v58 = vsel %vm1766_vm4, %v1837_v52, 0 }
 0x733   : > { %1851 = vmatpush.bf16.xpose.msra.mxu3 %v1842_v58 }
 0x734   : > { %v4041_v59 = vpop.eup %4040 }
 0x735   : > { %v1803_v15 = vsel %vm1787_vm6, %v4041_v59, 0.0 }
 0x736   : > { %1804 = vadd.xlane.f32.xlu1 %v1803_v15 }
 0x739   : > { %v1971_v3 = vpop.permute.xlu2 %1970 }
 0x73a   : > { %v1976_v6 = vsel %vm1766_vm4, %v1971_v3, 0 }
 0x741   : > { %v1969_v10 = vpop.permute.xlu2 %1968 }
 0x742   : > { %1901 = vrot.lane.b32.xlu0 %v1760_v30, %s4199_s3 }
 0x74f   : > { %1903 = vrot.lane.b32.xlu1 %v1765_v26, %s4199_s3 }
 0x7a1   : > { %v1802_v61 = vpop.xlane.xlu0 %1801 }
 0x7a2   : > { %4042 = vrcp.f32 %v1802_v61 }
 0x7a8   : > { %v4043_v63 = vpop.eup %4042 }
 0x7a9   : > { %v1805_v62 = vpop.xlane.xlu1 %1804  ;;  %v1808_v1 = vmul.f32 %v4043_v63, %v4039_v55 }
 0x7aa   : > { %4044 = vrcp.f32 %v1805_v62 }
 0x7b0   : > { %v4045_v0 = vpop.eup %4044 }
 0x7b1   : > { %v1809_v2 = vmul.f32 %v4045_v0, %v4041_v59 }
 0x7b3   : > { %v1810_v19 = vpack.c.bf16 %v1809_v2, %v1808_v1 }
 0x7b4   : > { %v1902_v9 = vpop.permute.xlu0 %1901 }
 0x7b5   : > { %3464 = vmatmul.msk.bf16.vlgmr.msrb.gmra.mxu3 %vm1787_vm6, %v1810_v19 }
 0x7b6   : > { %1985 = vmatpush.bf16.xpose.msrb.mxu3 %v1976_v6 }
 0x7c1   : > { %v1904_v7 = vpop.permute.xlu1 %1903 }
 0x7c2   : > { %v1909_v8 = vsel %vm1766_vm4, %v1904_v7, 0 }
 0x7c3   : > { %1918 = vmatpush.bf16.xpose.msrb.mxu2 %v1909_v8 }
 0x7c5   : > { %3465 = vmatmul.msk.bf16.vlgmr.msra.gmra.mxu3 %vm1766_vm4, %v1835_v60 }
 0x7ca   : > { %3467 = vmatmul.msk.bf16.vlgmr.msrb.gmra.mxu2 %vm1766_vm4, %v1902_v9 }
 0x7d5   : > { %3469 = vmatmul.msk.bf16.vlgmr.msrb.gmra.mxu3 %vm1766_vm4, %v1969_v10 }
 0x838   : > { %v4768_v11 = vpop.f32.mrf.mxu3 }
 0x840   : > { %v4770_v13 = vpop.f32.mrf.mxu3 }
 0x848   : > { %v1853_v14 = vpop.f32.mrf.mxu3 }
 0x849   : > { %v1854_v16 = vadd.f32 %v1853_v14, %v4746_v40 }
 0x84b   : > { %v1858_v17 = vsel %vm1787_vm6, %v1854_v16, -inf }
 0x84c   : > { %1859 = vmax.xlane.f32.xlu1 %v1858_v17 }
 0x84d   : > { %v1920_v18 = vpop.f32.mrf.mxu2 }
 0x84e   : > { %v1921_v20 = vadd.f32 %v1920_v18, %v4746_v40 }
 0x850   : > { %v1855_v21 = vpop.f32.mrf.mxu3  ;;  %v1925_v22 = vsel %vm1787_vm6, %v1921_v20, -inf }
 0x851   : > { %v1856_v23 = vadd.f32 %v1855_v21, %v4750_v44  ;;  %1926 = vmax.xlane.f32.xlu2 %v1925_v22 }
 0x853   : > { %v1861_v24 = vsel %vm1787_vm6, %v1856_v23, -inf }
 0x854   : > { %1862 = vmax.xlane.f32.xlu0 %v1861_v24 }
 0x855   : > { %v1922_v25 = vpop.f32.mrf.mxu2 }
 0x856   : > { %v1923_v26 = vadd.f32 %v1922_v25, %v4750_v44 }
 0x858   : > { %v1987_v27 = vpop.f32.mrf.mxu3  ;;  %v1928_v28 = vsel %vm1787_vm6, %v1923_v26, -inf }
 0x859   : > { %v1988_v29 = vadd.f32 %v1987_v27, %v4746_v40  ;;  %1929 = vmax.xlane.f32.xlu1 %v1928_v28 }
 0x85b   : > { %v1992_v30 = vsel %vm1787_vm6, %v1988_v29, -inf }
 0x85c   : > { %1993 = vmax.xlane.f32.xlu0 %v1992_v30  ;;  %v3851_v30 = vld [vmem:[%s4439_s8 + $0x38] sm:$0xff] }
 0x85d   : > { %2132 = vmatpush.bf16.msrb.mxu1 %v3851_v30  ;;  %v3603_v30 = vld [vmem:[%s4463_s20 + $0xd0] sm:$0xf0] }
 0x860   : > { %v1989_v31 = vpop.f32.mrf.mxu3 }
 0x861   : > { %v1990_v32 = vadd.f32 %v1989_v31, %v4750_v44  ;;  %v3850_v31 = vld [vmem:[%s4439_s8 + $0x30] sm:$0xff] }
 0x862   : > { %2133 = vmatpush.bf16.msrb.mxu1 %v3850_v31  ;;  %v3609_v31 = vld [vmem:[%s4463_s20 + $0xc8] sm:$0xf] }
 0x863   : > { %v1995_v33 = vsel %vm1787_vm6, %v1990_v32, -inf }
 0x864   : > { %1996 = vmax.xlane.f32.xlu2 %v1995_v33  ;;  %v3849_v33 = vld [vmem:[%s4439_s8 + $0x28] sm:$0xff] }
 0x866   : > { %2134 = vmatpush.bf16.msrb.mxu1 %v3849_v33 }
 0x87c   : > { %1881 = vrot.lane.b32.xlu2 %v4742_v35, %s4196_s28 }
 0x8bf   : > { %v1860_v34 = vpop.xlane.xlu1 %1859 }
 0x8c0   : > { %v1864_v38 = vsub.f32 %v1854_v16, %v1860_v34 }
 0x8c2   : > { %v1866_v40 = vmul.f32 1.442695, %v1864_v38 }
 0x8c4   : > { %v1927_v36 = vpop.xlane.xlu2 %1926 }
 0x8c5   : > { %v1931_v37 = vsub.f32 %v1921_v20, %v1927_v36 }
 0x8c7   : > { %v1933_v39 = vmul.f32 1.442695, %v1931_v37  ;;  %v1863_v41 = vpop.xlane.xlu0 %1862 }
 0x8c8   : > { %v1865_v50 = vsub.f32 %v1856_v23, %v1863_v41 }
 0x8c9   : > { %4046 = vpow2.f32 %v1933_v39 }
 0x8ca   : > { %4048 = vpow2.f32 %v1866_v40  ;;  %v1868_v49 = vmul.f32 1.442695, %v1865_v50  ;;  %v3846_v50 = vld [vmem:[%s4439_s8 + $0x10] sm:$0xff] }
 0x8cc   : > { %v1930_v42 = vpop.xlane.xlu1 %1929 }
 0x8cd   : > { %v1932_v43 = vsub.f32 %v1923_v26, %v1930_v42  ;;  %v3848_v42 = vld [vmem:[%s4439_s8 + $0x20] sm:$0xff] }
 0x8ce   : > { %2135 = vmatpush.bf16.msrb.mxu1 %v3848_v42 }
 0x8cf   : > { %v4047_v45 = vpop.eup %4046  ;;  %v1935_v44 = vmul.f32 1.442695, %v1932_v43  ;;  %v1994_v46 = vpop.xlane.xlu0 %1993  ;;  %v3847_v43 = vld [vmem:[%s4439_s8 + $0x18] sm:$0xff] }
 0x8d0   : > { %v1998_v47 = vsub.f32 %v1988_v29, %v1994_v46  ;;  %v1937_v48 = vsel %vm1787_vm6, %v4047_v45, 0.0  ;;  %v4049_v53 = vpop.eup %4048 }
 0x8d1   : > { %4050 = vpow2.f32 %v1935_v44  ;;  %1938 = vadd.xlane.f32.xlu1 %v1937_v48  ;;  %v1870_v52 = vsel %vm1787_vm6, %v4049_v53, 0.0  ;;  %v3844_v44 = vld [vmem:[%s4439_s8] sm:$0xff] }
 0x8d2   : > { %v2000_v51 = vmul.f32 1.442695, %v1998_v47  ;;  %4052 = vpow2.f32 %v1868_v49  ;;  %2136 = vmatpush.bf16.msrb.mxu1 %v3847_v43  ;;  %v3587_v43 = vld [vmem:[%s4463_s20 + $0xb0] sm:$0xf0] }
 0x8d4   : > { %4054 = vpow2.f32 %v2000_v51 }
 0x8d6   : > { %2137 = vmatpush.bf16.msrb.mxu1 %v3846_v50  ;;  %v3593_v50 = vld [vmem:[%s4463_s20 + $0xa8] sm:$0xf] }
 0x8d7   : > { %v4051_v54 = vpop.eup %4050  ;;  %v1997_v55 = vpop.xlane.xlu2 %1996 }
 0x8d8   : > { %v1999_v56 = vsub.f32 %v1990_v32, %v1997_v55  ;;  %v1940_v57 = vsel %vm1787_vm6, %v4051_v54, 0.0  ;;  %v4053_v59 = vpop.eup %4052 }
 0x8d9   : > { %1941 = vadd.xlane.f32.xlu0 %v1940_v57  ;;  %1871 = vadd.xlane.f32.xlu1 %v1870_v52  ;;  %v1873_v61 = vsel %vm1787_vm6, %v4053_v59, 0.0 }
 0x8da   : > { %v2002_v58 = vmul.f32 1.442695, %v1999_v56  ;;  %v4055_v15 = vpop.eup %4054 }
 0x8db   : > { %v2004_v62 = vsel %vm1787_vm6, %v4055_v15, 0.0 }
 0x8dc   : > { %4056 = vpow2.f32 %v2002_v58 }
 0x8df   : > { %v1882_v60 = vpop.permute.xlu2 %1881 }
 0x8e0   : > { %1894 = vmatpush.bf16.msrb.mxu0 %v1882_v60 }
 0x8e1   : > { %1874 = vadd.xlane.f32.xlu0 %v1873_v61  ;;  %2005 = vadd.xlane.f32.xlu1 %v2004_v62 }
 0x8e2   : > { %v4057_v63 = vpop.eup %4056 }
 0x8e3   : > { %v2007_v0 = vsel %vm1787_vm6, %v4057_v63, 0.0 }
 0x8e9   : > { %2008 = vadd.xlane.f32.xlu0 %v2007_v0 }
 0x8fa   : > { %1948 = vrot.lane.b32.xlu1 %v4742_v35, %s4199_s3 }
 0x8fd   : > { %2015 = vrot.lane.b32.xlu0 %v4742_v35, %s4198_s0 }
 0x944   : > { %v1939_v1 = vpop.xlane.xlu1 %1938 }
 0x94c   : > { %v1942_v2 = vpop.xlane.xlu0 %1941  ;;  %v1872_v3 = vpop.xlane.xlu1 %1871 }
 0x94d   : > { %4058 = vrcp.f32 %v1872_v3 }
 0x953   : > { %v4059_v6 = vpop.eup %4058 }
 0x954   : > { %v1875_v19 = vpop.xlane.xlu0 %1874  ;;  %v1878_v8 = vmul.f32 %v4059_v6, %v4049_v53  ;;  %v2006_v16 = vpop.xlane.xlu1 %2005 }
 0x955   : > { %4060 = vrcp.f32 %v1875_v19 }
 0x956   : > { %4062 = vrcp.f32 %v1942_v2 }
 0x957   : > { %4064 = vrcp.f32 %v1939_v1 }
 0x95b   : > { %v4061_v7 = vpop.eup %4060 }
 0x95c   : > { %v1879_v9 = vmul.f32 %v4061_v7, %v4053_v59  ;;  %v2009_v14 = vpop.xlane.xlu0 %2008  ;;  %v4063_v35 = vpop.eup %4062 }
 0x95d   : > { %4066 = vrcp.f32 %v2009_v14  ;;  %v4065_v17 = vpop.eup %4064  ;;  %v1946_v20 = vmul.f32 %v4063_v35, %v4051_v54  ;;  %v3882_v14 = vld [vmem:[%s4463_s20 + $0xec] sm:$0xf0] }
 0x95e   : > { %v1880_v10 = vpack.c.bf16 %v1879_v9, %v1878_v8  ;;  %4068 = vrcp.f32 %v2006_v16  ;;  %v1945_v22 = vmul.f32 %v4065_v17, %v4047_v45  ;;  %v3845_v45 = vld [vmem:[%s4439_s8 + $0x8] sm:$0xff]  ;;  %v3880_v16 = vld [vmem:[%s4463_s20 + $0xe4] sm:$0xf]  ;;  %v3619_v17 = vld [vmem:[%s4463_s20 + $0xf0] sm:$0xf0] }
 0x95f   : > { %2138 = vmatpush.bf16.msrb.mxu1 %v3845_v45  ;;  %v3875_v45 = vld [vmem:[%s4463_s20 + $0xb4] sm:$0xf0] }
 0x960   : > { %3466 = vmatmul.msk.bf16.vlgmr.msrb.gmra.mxu0 %vm1787_vm6, %v1880_v10  ;;  %v1947_v25 = vpack.c.bf16 %v1946_v20, %v1945_v22  ;;  %v3617_v10 = vld [vmem:[%s4463_s20 + $0xe0] sm:$0xf]  ;;  %v3883_v20 = vld [vmem:[%s4463_s20 + $0xf4] sm:$0xf0] }
 0x961   : > { %v3618_v35 = vor.u32 %v3882_v14, %v3617_v10  ;;  %v3537_v14 = vld [vmem:[%s4463_s20 + $0x40] sm:$0xf] }
 0x963   : > { %v4067_v18 = vpop.eup %4066  ;;  %2139 = vmatpush.bf16.msrb.mxu1 %v3844_v44 }
 0x964   : > { %v4069_v21 = vpop.eup %4068  ;;  %v2013_v24 = vmul.f32 %v4067_v18, %v4057_v63  ;;  %v3625_v18 = vld [vmem:[%s4463_s20 + $0xe8] sm:$0xf] }
 0x965   : > { %v2012_v26 = vmul.f32 %v4069_v21, %v4055_v15  ;;  %v3622_v21 = vor.u32 %v3880_v16, %v3619_v17  ;;  %v3626_v22 = vor.u32 %v3883_v20, %v3625_v18  ;;  %v3862_v16 = vld [vmem:[%s4463_s20 + $0x4c] sm:$0xf0]  ;;  %v3539_v18 = vld [vmem:[%s4463_s20 + $0x50] sm:$0xf0]  ;;  %v3545_v20 = vld [vmem:[%s4463_s20 + $0x48] sm:$0xf] }
 0x966   : > { %v3538_v17 = vor.u32 %v3862_v16, %v3537_v14 }
 0x967   : > { %v2014_v28 = vpack.c.bf16 %v2013_v24, %v2012_v26  ;;  %v3627_v24 = vld [vmem:[%s4463_s20 + $0xf8] sm:$0xf0]  ;;  %2423 = vmatpush.bf16.msra.mxu3 %v3622_v21  ;;  %v3601_v26 = vld [vmem:[%s4463_s20 + $0xc0] sm:$0xf]  ;;  %v3863_v21 = vld [vmem:[%s4463_s20 + $0x54] sm:$0xf0] }
 0x96c   : > { %v1949_v23 = vpop.permute.xlu1 %1948 }
 0x96d   : > { %1961 = vmatpush.bf16.msra.mxu2 %v1949_v23  ;;  %v3881_v23 = vld [vmem:[%s4463_s20 + $0xec] sm:$0xf] }
 0x96f   : > { %v2016_v27 = vpop.permute.xlu0 %2015 }
 0x970   : > { %3468 = vmatmul.msk.bf16.vlgmr.msra.gmra.mxu2 %vm1787_vm6, %v1947_v25  ;;  %2028 = vmatpush.bf16.msra.mxu0 %v2016_v27  ;;  %v3630_v25 = vor.u32 %v3881_v23, %v3627_v24  ;;  %v3878_v27 = vld [vmem:[%s4463_s20 + $0xcc] sm:$0xf0]  ;;  %v3546_v23 = vor.u32 %v3863_v21, %v3545_v20  ;;  %v3861_v24 = vld [vmem:[%s4463_s20 + $0x4c] sm:$0xf]  ;;  %v3915_v20 = vld [vmem:[%s4473_s9 + $0xf8] sm:$0xff] }
 0x971   : > { %2409 = vmatpush.bf16.msrb.mxu2 %v3618_v35  ;;  %v3860_v35 = vld [vmem:[%s4463_s20 + $0x44] sm:$0xf]  ;;  %v3906_v21 = vld [vmem:[%s4473_s9 + $0xb0] sm:$0xff] }
 0x972   : > { %2451 = vmatpush.bf16.msra.mxu1 %v3630_v25  ;;  %v3547_v25 = vld [vmem:[%s4463_s20 + $0x58] sm:$0xf0] }
 0x973   : > { %3470 = vmatmul.msk.bf16.vlgmr.msra.gmra.mxu0 %vm1787_vm6, %v2014_v28  ;;  %v3876_v28 = vld [vmem:[%s4463_s20 + $0xc4] sm:$0xf] }
 0x974   : > { %2437 = vmatpush.bf16.msrb.mxu0 %v3626_v22  ;;  %v3606_v33 = vor.u32 %v3876_v28, %v3603_v30  ;;  %v3542_v22 = vor.u32 %v3860_v35, %v3539_v18  ;;  %v3858_v28 = vld [vmem:[%s4463_s20 + $0x2c] sm:$0xf0] }
 0x976   : > { %2424 = vmatpush.bf16.msra.mxu3 %v3606_v33  ;;  %v3859_v33 = vld [vmem:[%s4463_s20 + $0x34] sm:$0xf0] }
 0x9dd   : > { %v1896_v29 = vpop.f32.mrf.mxu0 }
 0x9e5   : > { %v1898_v34 = vpop.f32.mrf.mxu0 }
 0x9e6   : > { %v4016_v39 = vpack.i.bf16 %v1898_v34, %v1896_v29  ;;  %v3602_v29 = vor.u32 %v3878_v27, %v3601_v26  ;;  %v3550_v26 = vor.u32 %v3861_v24, %v3547_v25  ;;  %v3521_v27 = vld [vmem:[%s4463_s20 + $0x20] sm:$0xf]  ;;  %v3899_v24 = vld [vmem:[%s4473_s9 + $0x78] sm:$0xff]  ;;  %v3905_v25 = vld [vmem:[%s4473_s9 + $0xa8] sm:$0xff] }
 0x9e7   : > { %v3522_v30 = vor.u32 %v3858_v28, %v3521_v27  ;;  %v3890_v27 = vld [vmem:[%s4473_s9 + $0x30] sm:$0xff] }
 0x9e8   : > { %2410 = vmatpush.bf16.msrb.mxu2 %v3602_v29  ;;  %v3856_v29 = vld [vmem:[%s4463_s20 + $0x24] sm:$0xf]  ;;  %v3898_v28 = vld [vmem:[%s4473_s9 + $0x70] sm:$0xff] }
 0x9f0   : > { %v2030_v38 = vpop.f32.mrf.mxu0 }
 0x9f3   : > { %v1963_v32 = vpop.f32.mrf.mxu2 }
 0x9f8   : > { %v2032_v41 = vpop.f32.mrf.mxu0 }
 0x9f9   : > { %v4021_v40 = vpack.i.bf16 %v2032_v41, %v2030_v38  ;;  %v3874_v41 = vld [vmem:[%s4463_s20 + $0xac] sm:$0xf0] }
 0x9fb   : > { %v1965_v36 = vpop.f32.mrf.mxu2 }
 0x9fc   : > { %v4011_v37 = vpack.i.bf16 %v1965_v36, %v1963_v32  ;;  %v3879_v32 = vld [vmem:[%s4463_s20 + $0xd4] sm:$0xf0]  ;;  %v3877_v36 = vld [vmem:[%s4463_s20 + $0xcc] sm:$0xf] }
 0x9fd   : > { %v3610_v34 = vor.u32 %v3879_v32, %v3609_v31  ;;  %v3523_v31 = vld [vmem:[%s4463_s20 + $0x30] sm:$0xf0]  ;;  %v3529_v32 = vld [vmem:[%s4463_s20 + $0x28] sm:$0xf] }
 0x9fe   : > { %4012 = vrot.lane.b32.xlu2 %v4011_v37, %s4199_s3  ;;  %v3611_v37 = vld [vmem:[%s4463_s20 + $0xd8] sm:$0xf0] }
 0x9ff   : > { %v3614_v38 = vor.u32 %v3877_v36, %v3611_v37  ;;  %2438 = vmatpush.bf16.msrb.mxu0 %v3610_v34  ;;  %v3526_v36 = vor.u32 %v3856_v29, %v3523_v31  ;;  %v3530_v37 = vor.u32 %v3859_v33, %v3529_v32  ;;  %v3904_v29 = vld [vmem:[%s4473_s9 + $0xa0] sm:$0xff]  ;;  %v3889_v31 = vld [vmem:[%s4473_s9 + $0x28] sm:$0xff]  ;;  %v3903_v33 = vld [vmem:[%s4473_s9 + $0x98] sm:$0xff] }
 0xa00   : > { %v3897_v32 = vld [vmem:[%s4473_s9 + $0x68] sm:$0xff] }
 0xa01   : > { %2452 = vmatpush.bf16.msra.mxu1 %v3614_v38  ;;  %v3857_v38 = vld [vmem:[%s4463_s20 + $0x2c] sm:$0xf] }
 0xa06   : > { %4017 = vrot.lane.b32.xlu2 %v4016_v39, %s4198_s0  ;;  %v3585_v39 = vld [vmem:[%s4463_s20 + $0xa0] sm:$0xf] }
 0xa07   : > { %v3586_v42 = vor.u32 %v3874_v41, %v3585_v39  ;;  %v3531_v39 = vld [vmem:[%s4463_s20 + $0x38] sm:$0xf0]  ;;  %v3505_v41 = vld [vmem:[%s4463_s20] sm:$0xf] }
 0xa09   : > { %2411 = vmatpush.bf16.msrb.mxu2 %v3586_v42  ;;  %v3534_v42 = vor.u32 %v3857_v38, %v3531_v39  ;;  %v3902_v38 = vld [vmem:[%s4473_s9 + $0x90] sm:$0xff] }
 0xa0a   : > { %v3910_v39 = vld [vmem:[%s4473_s9 + $0xd0] sm:$0xff] }
 0xa0e   : > { %4022 = vrot.lane.b32.xlu2 %v4021_v40, %s4196_s28  ;;  %v3872_v40 = vld [vmem:[%s4463_s20 + $0xa4] sm:$0xf] }
 0xa0f   : > { %v3590_v44 = vor.u32 %v3872_v40, %v3587_v43  ;;  %v3854_v43 = vld [vmem:[%s4463_s20 + $0xc] sm:$0xf0] }
 0xa11   : > { %2425 = vmatpush.bf16.msra.mxu3 %v3590_v44  ;;  %v3506_v44 = vor.u32 %v3854_v43, %v3505_v41  ;;  %v4938_v41 = vld [vmem:[%s4468_s19] sm:$0xf]  ;;  %v3901_v43 = vld [vmem:[%s4473_s9 + $0x88] sm:$0xff] }
 0xa58   : > { %v4013_v46 = vpop.permute.xlu2 %4012 }
 0xa59   : > { %v4015_v54 = vunpack.i.h.bf16 %v4013_v46  ;;  %v4014_v55 = vunpack.i.l.bf16 %v4013_v46  ;;  %v3594_v46 = vor.u32 %v3875_v45, %v3593_v50  ;;  %v3852_v50 = vld [vmem:[%s4463_s20 + $0x4] sm:$0xf]  ;;  %v3507_v45 = vld [vmem:[%s4463_s20 + $0x10] sm:$0xf0] }
 0xa5b   : > { %2439 = vmatpush.bf16.msrb.mxu0 %v3594_v46  ;;  %v3510_v46 = vor.u32 %v3852_v50, %v3507_v45  ;;  %v3909_v50 = vld [vmem:[%s4473_s9 + $0xc8] sm:$0xff]  ;;  %v2243_v45 = vperm.slane %v4938_v41, 2 }
 0xa60   : > { %v4018_v47 = vpop.permute.xlu2 %4017 }
 0xa61   : > { %v4020_v48 = vunpack.i.h.bf16 %v4018_v47  ;;  %v4019_v49 = vunpack.i.l.bf16 %v4018_v47  ;;  %v3873_v47 = vld [vmem:[%s4463_s20 + $0xac] sm:$0xf] }
 0xa63   : > { %v2060_v51 = vsel %vm1766_vm4, %v4770_v13, %v4020_v48  ;;  %v2059_v53 = vsel %vm1766_vm4, %v4768_v11, %v4019_v49  ;;  %v4028_v13 = vld [vmem:[%s5187_s21] ss:$0 sm:$0xff]  ;;  %v3595_v48 = vld [vmem:[%s4463_s20 + $0xb8] sm:$0xf0] }
 0xa64   : > { %v2062_v58 = vsel %vm2061_vm8, %v2059_v53, %v4014_v55  ;;  %v2063_v59 = vsel %vm2061_vm8, %v2060_v51, %v4015_v54  ;;  %v3598_v49 = vor.u32 %v3873_v47, %v3595_v48  ;;  %v3569_v51 = vld [vmem:[%s4463_s20 + $0x80] sm:$0xf]  ;;  %v3870_v53 = vld [vmem:[%s4463_s20 + $0x8c] sm:$0xf0]  ;;  %v3868_v54 = vld [vmem:[%s4463_s20 + $0x84] sm:$0xf] }
 0xa65   : > { %v3570_v55 = vor.u32 %v3870_v53, %v3569_v51  ;;  %v3513_v47 = vld [vmem:[%s4463_s20 + $0x8] sm:$0xf]  ;;  %v3855_v48 = vld [vmem:[%s4463_s20 + $0x14] sm:$0xf0] }
 0xa66   : > { %2453 = vmatpush.bf16.msra.mxu1 %v3598_v49  ;;  %v3853_v49 = vld [vmem:[%s4463_s20 + $0xc] sm:$0xf]  ;;  %v3514_v53 = vor.u32 %v3855_v48, %v3513_v47  ;;  %v3894_v47 = vld [vmem:[%s4473_s9 + $0x50] sm:$0xff] }
 0xa67   : > { %2412 = vmatpush.bf16.msrb.mxu2 %v3570_v55 }
 0xa68   : > { %v4023_v56 = vpop.permute.xlu2 %4022 }
 0xa69   : > { %v4025_v57 = vunpack.i.h.bf16 %v4023_v56  ;;  %v4024_v52 = vunpack.i.l.bf16 %v4023_v56  ;;  %v3571_v56 = vld [vmem:[%s4463_s20 + $0x90] sm:$0xf0] }
 0xa6b   : > { %v2065_v15 = vsel %vm2064_vm9, %v2062_v58, %v4024_v52  ;;  %v2066_v60 = vsel %vm2064_vm9, %v2063_v59, %v4025_v57  ;;  %v3577_v57 = vld [vmem:[%s4463_s20 + $0x88] sm:$0xf]  ;;  %v3871_v52 = vld [vmem:[%s4463_s20 + $0x94] sm:$0xf0]  ;;  %v3574_v58 = vor.u32 %v3868_v54, %v3571_v56  ;;  %v3515_v54 = vld [vmem:[%s4463_s20 + $0x18] sm:$0xf0] }
 0xa6c   : > { %v2067_v61 = vpack.c.bf16 %v2066_v60, %v2065_v15  ;;  %v3578_v59 = vor.u32 %v3871_v52, %v3577_v57  ;;  %v3869_v15 = vld [vmem:[%s4463_s20 + $0x8c] sm:$0xf]  ;;  %v3579_v60 = vld [vmem:[%s4463_s20 + $0x98] sm:$0xf0]  ;;  %v3518_v55 = vor.u32 %v3853_v49, %v3515_v54 }
 0xa6d   : > { %2426 = vmatpush.bf16.msra.mxu3 %v3574_v58 }
 0xa6e   : > { %2140 = vmatmul.bf16.vlgmr.msrb.gmra.mxu1 %v2067_v61  ;;  %v3582_v61 = vor.u32 %v3869_v15, %v3579_v60  ;;  %2440 = vmatpush.bf16.msrb.mxu0 %v3578_v59 }
 0xa70   : > { %2454 = vmatpush.bf16.msra.mxu1 %v3582_v61 }
 0xaeb   : > { %v2141_v62 = vpop.f32.mrf.mxu1 }
 0xaec   : > { %v2146_v11 = vadd.f32 %v2141_v62, %v4657_v4  ;;  %v3866_v62 = vld [vmem:[%s4463_s20 + $0x6c] sm:$0xf0] }
 0xaee   : > { %v4820_v63 = vadd.f32 %v4028_v13, %v2146_v11  ;;  %v3864_v11 = vld [vmem:[%s4463_s20 + $0x64] sm:$0xf] }
 0xaf0   : > { %2156 = vadd.xlane.f32.xlu0 %v4820_v63 }
 0xaf3   : > { %v2143_v0 = vpop.f32.mrf.mxu1 }
 0xaf4   : > { %v2147_v1 = vadd.f32 %v2143_v0, %v4660_v5 }
 0xaf6   : > { %v4824_v2 = vadd.f32 %v4028_v13, %v2147_v1  ;;  %v3553_v13 = vld [vmem:[%s4463_s20 + $0x60] sm:$0xf]  ;;  %v3555_v1 = vld [vmem:[%s4463_s20 + $0x70] sm:$0xf0] }
 0xaf7   : > { %v3554_v0 = vor.u32 %v3866_v62, %v3553_v13 }
 0xaf8   : > { %2158 = vadd.xlane.f32.xlu1 %v4824_v2 }
 0xaf9   : > { %2413 = vmatpush.bf16.msrb.mxu2 %v3554_v0 }
 0xafd   : > { %2414 = vmatpush.bf16.msrb.mxu2 %v3538_v17 }
 0xb01   : > { %2415 = vmatpush.bf16.msrb.mxu2 %v3522_v30  ;;  %v3912_v30 = vld [vmem:[%s4473_s9 + $0xe0] sm:$0xff] }
 0xb05   : > { %2416 = vmatpush.bf16.msrb.mxu2 %v3506_v44  ;;  %v2244_v44 = vperm.slane %v4938_v41, 3 }
 0xb63   : > { %v2157_v3 = vpop.xlane.xlu0 %2156 }
 0xb64   : > { %v2160_v4 = vmul.f32 %v2157_v3, %v4663_v12  ;;  %v3561_v3 = vld [vmem:[%s4463_s20 + $0x68] sm:$0xf] }
 0xb66   : > { %v4829_v19 = vsub.f32 %v4820_v63, %v2160_v4  ;;  %v3867_v4 = vld [vmem:[%s4463_s20 + $0x74] sm:$0xf0] }
 0xb68   : > { %v2164_v6 = vmul.f32 %v4829_v19, %v4829_v19 }
 0xb6a   : > { %2166 = vadd.xlane.f32.xlu2 %v2164_v6  ;;  %v3558_v6 = vor.u32 %v3864_v11, %v3555_v1 }
 0xb6b   : > { %v2159_v5 = vpop.xlane.xlu1 %2158 }
 0xb6c   : > { %v2161_v7 = vmul.f32 %v2159_v5, %v4663_v12  ;;  %v3562_v5 = vor.u32 %v3867_v4, %v3561_v3  ;;  %2427 = vmatpush.bf16.msra.mxu3 %v3558_v6 }
 0xb6e   : > { %v4835_v8 = vsub.f32 %v4824_v2, %v2161_v7  ;;  %v3865_v7 = vld [vmem:[%s4463_s20 + $0x6c] sm:$0xf]  ;;  %2441 = vmatpush.bf16.msrb.mxu0 %v3562_v5  ;;  %v4029_v5 = vld [vmem:[%s5188_s26] ss:$0 sm:$0xff] }
 0xb70   : > { %v2165_v9 = vmul.f32 %v4835_v8, %v4835_v8  ;;  %2428 = vmatpush.bf16.msra.mxu3 %v3542_v22  ;;  %v3914_v22 = vld [vmem:[%s4473_s9 + $0xf0] sm:$0xff] }
 0xb72   : > { %2168 = vadd.xlane.f32.xlu0 %v2165_v9  ;;  %v3563_v9 = vld [vmem:[%s4463_s20 + $0x78] sm:$0xf0]  ;;  %2442 = vmatpush.bf16.msrb.mxu0 %v3546_v23 }
 0xb73   : > { %v3566_v10 = vor.u32 %v3865_v7, %v3563_v9  ;;  %v3891_v23 = vld [vmem:[%s4473_s9 + $0x38] sm:$0xff] }
 0xb74   : > { %2429 = vmatpush.bf16.msra.mxu3 %v3526_v36  ;;  %2797 = vmatpush.bf16.msra.mxu2 %v3891_v23  ;;  %v3888_v36 = vld [vmem:[%s4473_s9 + $0x20] sm:$0xff] }
 0xb75   : > { %2455 = vmatpush.bf16.msra.mxu1 %v3566_v10 }
 0xb76   : > { %2443 = vmatpush.bf16.msrb.mxu0 %v3530_v37  ;;  %v3896_v37 = vld [vmem:[%s4473_s9 + $0x60] sm:$0xff] }
 0xb78   : > { %2430 = vmatpush.bf16.msra.mxu3 %v3510_v46  ;;  %2798 = vmatpush.bf16.msra.mxu2 %v3890_v27  ;;  %v3886_v46 = vld [vmem:[%s4473_s9 + $0x10] sm:$0xff] }
 0xb79   : > { %2456 = vmatpush.bf16.msra.mxu1 %v3550_v26  ;;  %v3913_v26 = vld [vmem:[%s4473_s9 + $0xe8] sm:$0xff] }
 0xb7a   : > { %2444 = vmatpush.bf16.msrb.mxu0 %v3514_v53  ;;  %v3908_v53 = vld [vmem:[%s4473_s9 + $0xc0] sm:$0xff] }
 0xb7c   : > { %2811 = vmatpush.bf16.msrb.mxu3 %v3899_v24  ;;  %2799 = vmatpush.bf16.msra.mxu2 %v3889_v31 }
 0xb7d   : > { %2457 = vmatpush.bf16.msra.mxu1 %v3534_v42  ;;  %v3895_v42 = vld [vmem:[%s4473_s9 + $0x58] sm:$0xff] }
 0xb80   : > { %2812 = vmatpush.bf16.msrb.mxu3 %v3898_v28  ;;  %2800 = vmatpush.bf16.msra.mxu2 %v3888_v36 }
 0xb81   : > { %2458 = vmatpush.bf16.msra.mxu1 %v3518_v55 }
 0xb84   : > { %2813 = vmatpush.bf16.msrb.mxu3 %v3897_v32 }
 0xb85   : > { %2839 = vmatpush.bf16.msrb.mxu1 %v3915_v20 }
 0xb88   : > { %2814 = vmatpush.bf16.msrb.mxu3 %v3896_v37 }
 0xb89   : > { %2840 = vmatpush.bf16.msrb.mxu1 %v3914_v22 }
 0xb8c   : > { %2815 = vmatpush.bf16.msrb.mxu3 %v3895_v42 }
 0xb8d   : > { %2841 = vmatpush.bf16.msrb.mxu1 %v3913_v26 }
 0xb90   : > { %2816 = vmatpush.bf16.msrb.mxu3 %v3894_v47 }
 0xb91   : > { %2842 = vmatpush.bf16.msrb.mxu1 %v3912_v30 }
 0xbdd   : > { %v2167_v34 = vpop.xlane.xlu2 %2166 }
 0xbde   : > { %v2170_v40 = vmul.f32 %v2167_v34, %v4663_v12  ;;  %v3911_v34 = vld [vmem:[%s4473_s9 + $0xd8] sm:$0xff] }
 0xbdf   : > { %2843 = vmatpush.bf16.msrb.mxu1 %v3911_v34 }
 0xbe0   : > { %v2172_v51 = vadd.f32 1e-05, %v2170_v40  ;;  %v3887_v40 = vld [vmem:[%s4473_s9 + $0x18] sm:$0xff] }
 0xbe1   : > { %2801 = vmatpush.bf16.msra.mxu2 %v3887_v40 }
 0xbe2   : > { %4070 = vrsqrt.f32 %v2172_v51  ;;  %vm2180_vm11 = vweird.f32 %v2172_v51 }
 0xbe3   : > { %2844 = vmatpush.bf16.msrb.mxu1 %v3910_v39 }
 0xbe5   : > { %v2169_v56 = vpop.xlane.xlu0 %2168  ;;  %2802 = vmatpush.bf16.msra.mxu2 %v3886_v46 }
 0xbe6   : > { %v2171_v57 = vmul.f32 %v2169_v56, %v4663_v12  ;;  %v2241_v56 = vperm.slane %v4938_v41, 0 }
 0xbe7   : > { %2845 = vmatpush.bf16.msrb.mxu1 %v3909_v50 }
 0xbe8   : > { %v4071_v52 = vpop.eup %4070  ;;  %v2173_v58 = vadd.f32 1e-05, %v2171_v57  ;;  %v2242_v57 = vperm.slane %v4938_v41, 1 }
 0xbe9   : > { %v2175_v59 = vmul.f32 %v4071_v52, %v2172_v51  ;;  %vm2181_vm10 = vweird.f32 %v4071_v52  ;;  %v3900_v51 = vld [vmem:[%s4473_s9 + $0x80] sm:$0xff] }
 0xbea   : > { %4072 = vrsqrt.f32 %v2173_v58  ;;  %vm2182_vm12 = vmor %vm2180_vm11, %vm2181_vm10  ;;  %vm2190_vm14 = vweird.f32 %v2173_v58 }
 0xbeb   : > { %v2176_v15 = vmul.f32 %v4071_v52, %v2175_v59  ;;  %2846 = vmatpush.bf16.msrb.mxu1 %v3908_v53 }
 0xbed   : > { %v2177_v60 = vmul.f32 0.5, %v2176_v15 }
 0xbef   : > { %v2178_v61 = vsub.f32 1.5, %v2177_v60 }
 0xbf0   : > { %v4073_v13 = vpop.eup %4072 }
 0xbf1   : > { %v2179_v62 = vmul.f32 %v4071_v52, %v2178_v61  ;;  %v2185_v11 = vmul.f32 %v4073_v13, %v2173_v58  ;;  %vm2191_vm13 = vweird.f32 %v4073_v13  ;;  %v3893_v58 = vld [vmem:[%s4473_s9 + $0x48] sm:$0xff] }
 0xbf2   : > { %vm2192_vm15 = vmor %vm2190_vm14, %vm2191_vm13  ;;  %2817 = vmatpush.bf16.msrb.mxu3 %v3893_v58 }
 0xbf3   : > { %v2186_v0 = vmul.f32 %v4073_v13, %v2185_v11  ;;  %v2183_v1 = vsel %vm2182_vm12, %v4071_v52, %v2179_v62  ;;  %v3885_v52 = vld [vmem:[%s4473_s9 + $0x8] sm:$0xff] }
 0xbf4   : > { %v2194_v6 = vmul.f32 %v2183_v1, %v4829_v19  ;;  %v4030_v19 = vld [vmem:[%s5190_s11] ss:$0 sm:$0xff]  ;;  %2803 = vmatpush.bf16.msra.mxu2 %v3885_v52 }
 0xbf5   : > { %v2187_v3 = vmul.f32 0.5, %v2186_v0  ;;  %v3884_v1 = vld [vmem:[%s4473_s9] sm:$0xff] }
 0xbf6   : > { %v2199_v14 = vmul.f32 %v4029_v5, %v2194_v6 }
 0xbf7   : > { %v2188_v4 = vsub.f32 1.5, %v2187_v3  ;;  %v3892_v3 = vld [vmem:[%s4473_s9 + $0x40] sm:$0xff] }
 0xbf8   : > { %v2204_v35 = vadd.f32 %v4030_v19, %v2199_v14  ;;  %2804 = vmatpush.bf16.msra.mxu2 %v3884_v1  ;;  %2818 = vmatpush.bf16.msrb.mxu3 %v3892_v3 }
 0xbf9   : > { %v2189_v7 = vmul.f32 %v4073_v13, %v2188_v4 }
 0xbfb   : > { %v2193_v9 = vsel %vm2192_vm15, %v4073_v13, %v2189_v7 }
 0xbfc   : > { %v2195_v10 = vmul.f32 %v2193_v9, %v4835_v8  ;;  %v3907_v8 = vld [vmem:[%s4473_s9 + $0xb8] sm:$0xff] }
 0xbfd   : > { %2825 = vmatpush.bf16.msra.mxu0 %v3907_v8 }
 0xbfe   : > { %v2200_v16 = vmul.f32 %v4029_v5, %v2195_v10 }
 0xc00   : > { %v2205_v17 = vadd.f32 %v4030_v19, %v2200_v16 }
 0xc01   : > { %2826 = vmatpush.bf16.msra.mxu0 %v3906_v21 }
 0xc02   : > { %v2206_v18 = vpack.c.bf16 %v2205_v17, %v2204_v35 }
 0xc04   : > { %2417 = vmatmul.bf16.vlgmr.msrb.gmra.mxu2 %v2206_v18  ;;  %2431 = vmatmul.bf16.vlgmr.msra.gmra.mxu3 %v2206_v18 }
 0xc05   : > { %2445 = vmatmul.bf16.vlgmr.msrb.gmra.mxu0 %v2206_v18  ;;  %2459 = vmatmul.bf16.vlgmr.msra.gmra.mxu1 %v2206_v18 }
 0xc06   : > { %2827 = vmatpush.bf16.msra.mxu0 %v3905_v25 }
 0xc0a   : > { %2828 = vmatpush.bf16.msra.mxu0 %v3904_v29 }
 0xc0e   : > { %2829 = vmatpush.bf16.msra.mxu0 %v3903_v33 }
 0xc12   : > { %2830 = vmatpush.bf16.msra.mxu0 %v3902_v38 }
 0xc16   : > { %2831 = vmatpush.bf16.msra.mxu0 %v3901_v43 }
 0xc1a   : > { %2832 = vmatpush.bf16.msra.mxu0 %v3900_v51 }
 0xc82   : > { %v2446_v48 = vpop.f32.mrf.mxu0  ;;  %v2460_v49 = vpop.f32.mrf.mxu1 }
 0xc83   : > { %v4950_v54 = vadd.f32 %v2446_v48, %v2243_v45  ;;  %v4952_v55 = vadd.f32 %v2460_v49, %v2244_v44 }
 0xc85   : > { %v2467_v59 = vmul.f32 %v4950_v54, %v4950_v54  ;;  %v2468_v15 = vmul.f32 %v4952_v55, %v4952_v55 }
 0xc87   : > { %v2475_v60 = vmul.f32 %v2467_v59, %v4950_v54  ;;  %v2476_v61 = vmul.f32 %v2468_v15, %v4952_v55  ;;  %v2418_v13 = vpop.f32.mrf.mxu2  ;;  %v2432_v62 = vpop.f32.mrf.mxu3 }
 0xc88   : > { %v4964_v11 = vadd.f32 %v2418_v13, %v2241_v56  ;;  %v4966_v0 = vadd.f32 %v2432_v62, %v2242_v57 }
 0xc89   : > { %v2483_v4 = vmul.f32 0.044715, %v2475_v60  ;;  %v2484_v6 = vmul.f32 0.044715, %v2476_v61 }
 0xc8a   : > { %v2465_v5 = vmul.f32 %v4964_v11, %v4964_v11  ;;  %v2466_v7 = vmul.f32 %v4966_v0, %v4966_v0  ;;  %v2448_v9 = vpop.f32.mrf.mxu0  ;;  %v2462_v10 = vpop.f32.mrf.mxu1 }
 0xc8b   : > { %v2491_v14 = vadd.f32 %v2483_v4, %v4950_v54  ;;  %v2492_v19 = vadd.f32 %v2484_v6, %v4952_v55  ;;  %v2449_v16 = vadd.f32 %v2448_v9, %v2243_v45  ;;  %v4976_v35 = vadd.f32 %v2462_v10, %v2244_v44 }
 0xc8c   : > { %v2473_v17 = vmul.f32 %v2465_v5, %v4964_v11  ;;  %v2474_v18 = vmul.f32 %v2466_v7, %v4966_v0 }
 0xc8d   : > { %v2499_v8 = vmul.f32 0.7978846, %v2491_v14  ;;  %v2471_v20 = vmul.f32 %v2449_v16, %v2449_v16  ;;  %v2472_v21 = vmul.f32 %v4976_v35, %v4976_v35  ;;  %v2500_v22 = vmul.f32 0.7978846, %v2492_v19 }
 0xc8e   : > { %v2481_v23 = vmul.f32 0.044715, %v2473_v17  ;;  %v2482_v24 = vmul.f32 0.044715, %v2474_v18 }
 0xc8f   : > { %v2479_v25 = vmul.f32 %v2471_v20, %v2449_v16  ;;  %v2480_v26 = vmul.f32 %v2472_v21, %v4976_v35  ;;  %v2420_v27 = vpop.f32.mrf.mxu2  ;;  %v2434_v28 = vpop.f32.mrf.mxu3  ;;  %4074 = vtanh.f32 %v2499_v8 }
 0xc90   : > { %v2489_v29 = vadd.f32 %v2481_v23, %v4964_v11  ;;  %v2490_v30 = vadd.f32 %v2482_v24, %v4966_v0  ;;  %v2421_v31 = vadd.f32 %v2420_v27, %v2241_v56  ;;  %v2435_v34 = vadd.f32 %v2434_v28, %v2242_v57 }
 0xc91   : > { %v2487_v32 = vmul.f32 0.044715, %v2479_v25  ;;  %v2488_v33 = vmul.f32 0.044715, %v2480_v26  ;;  %4076 = vtanh.f32 %v2500_v22 }
 0xc92   : > { %v2497_v36 = vmul.f32 0.7978846, %v2489_v29  ;;  %v2498_v37 = vmul.f32 0.7978846, %v2490_v30  ;;  %v2469_v38 = vmul.f32 %v2421_v31, %v2421_v31  ;;  %v2470_v40 = vmul.f32 %v2435_v34, %v2435_v34 }
 0xc93   : > { %v2495_v39 = vadd.f32 %v2487_v32, %v2449_v16  ;;  %v2496_v41 = vadd.f32 %v2488_v33, %v4976_v35 }
 0xc94   : > { %v2477_v42 = vmul.f32 %v2469_v38, %v2421_v31  ;;  %4078 = vtanh.f32 %v2497_v36  ;;  %v2478_v45 = vmul.f32 %v2470_v40, %v2435_v34 }
 0xc95   : > { %v2503_v43 = vmul.f32 0.7978846, %v2495_v39  ;;  %v2504_v50 = vmul.f32 0.7978846, %v2496_v41  ;;  %4080 = vtanh.f32 %v2498_v37  ;;  %v4075_v46 = vpop.eup %4074 }
 0xc96   : > { %v2485_v44 = vmul.f32 0.044715, %v2477_v42  ;;  %v2486_v47 = vmul.f32 0.044715, %v2478_v45  ;;  %v2515_v53 = vadd.f32 1.0, %v4075_v46 }
 0xc97   : > { %4082 = vtanh.f32 %v2503_v43  ;;  %v4077_v48 = vpop.eup %4076 }
 0xc98   : > { %4084 = vtanh.f32 %v2504_v50  ;;  %v2493_v49 = vadd.f32 %v2485_v44, %v2421_v31  ;;  %v2494_v51 = vadd.f32 %v2486_v47, %v2435_v34  ;;  %v2516_v52 = vadd.f32 1.0, %v4077_v48 }
 0xc99   : > { %v2523_v61 = vmul.f32 0.5, %v2515_v53 }
 0xc9a   : > { %v2501_v56 = vmul.f32 0.7978846, %v2493_v49  ;;  %v4079_v57 = vpop.eup %4078  ;;  %v2502_v58 = vmul.f32 0.7978846, %v2494_v51  ;;  %v2524_v62 = vmul.f32 0.5, %v2516_v52 }
 0xc9b   : > { %v4081_v59 = vpop.eup %4080  ;;  %v2513_v1 = vadd.f32 1.0, %v4079_v57  ;;  %v2531_v9 = vmul.f32 %v2523_v61, %v4950_v54 }
 0xc9c   : > { %4086 = vtanh.f32 %v2501_v56  ;;  %v2514_v4 = vadd.f32 1.0, %v4081_v59  ;;  %v2532_v19 = vmul.f32 %v2524_v62, %v4952_v55 }
 0xc9d   : > { %v4083_v15 = vpop.eup %4082  ;;  %4088 = vtanh.f32 %v2502_v58  ;;  %v2521_v17 = vmul.f32 0.5, %v2513_v1 }
 0xc9e   : > { %v4085_v60 = vpop.eup %4084  ;;  %v2519_v13 = vadd.f32 1.0, %v4083_v15  ;;  %v2522_v20 = vmul.f32 0.5, %v2514_v4 }
 0xc9f   : > { %v2520_v3 = vadd.f32 1.0, %v4085_v60  ;;  %v2529_v26 = vmul.f32 %v2521_v17, %v4964_v11  ;;  %v4031_v11 = vld [vmem:[%s993_s10] ss:$0 sm:$0xff] }
 0xca0   : > { %v2527_v6 = vmul.f32 0.5, %v2519_v13  ;;  %v2530_v54 = vmul.f32 %v2522_v20, %v4966_v0 }
 0xca1   : > { %v2528_v5 = vmul.f32 0.5, %v2520_v3 }
 0xca2   : > { %v4087_v7 = vpop.eup %4086  ;;  %v2535_v10 = vmul.f32 %v2527_v6, %v2449_v16 }
 0xca3   : > { %v4089_v14 = vpop.eup %4088  ;;  %v2536_v18 = vmul.f32 %v2528_v5, %v4976_v35  ;;  %v2517_v8 = vadd.f32 1.0, %v4087_v7 }
 0xca4   : > { %v2518_v21 = vadd.f32 1.0, %v4089_v14  ;;  %v2539_v22 = vpack.c.bf16 %v2535_v10, %v2531_v9 }
 0xca5   : > { %v2525_v23 = vmul.f32 0.5, %v2517_v8  ;;  %v2540_v24 = vpack.c.bf16 %v2536_v18, %v2532_v19 }
 0xca6   : > { %v2526_v25 = vmul.f32 0.5, %v2518_v21  ;;  %2833 = vmatmul.bf16.vlgmr.msra.gmra.mxu0 %v2539_v22 }
 0xca7   : > { %v2533_v27 = vmul.f32 %v2525_v23, %v2421_v31  ;;  %2847 = vmatmul.bf16.vlgmr.msrb.gmra.mxu1 %v2540_v24 }
 0xca8   : > { %v2534_v16 = vmul.f32 %v2526_v25, %v2435_v34 }
 0xca9   : > { %v2537_v55 = vpack.c.bf16 %v2533_v27, %v2529_v26 }
 0xcaa   : > { %v2538_v28 = vpack.c.bf16 %v2534_v16, %v2530_v54 }
 0xcab   : > { %2805 = vmatmul.bf16.vlgmr.msra.gmra.mxu2 %v2537_v55 }
 0xcac   : > { %2819 = vmatmul.bf16.vlgmr.msrb.gmra.mxu3 %v2538_v28 }
 0xd23   : > { %v2834_v29 = vpop.f32.mrf.mxu0 }
 0xd24   : > { %v2848_v33 = vpop.f32.mrf.mxu1 }
 0xd2b   : > { %v2836_v41 = vpop.f32.mrf.mxu0 }
 0xd2c   : > { %v2850_v42 = vpop.f32.mrf.mxu1 }
 0xd2e   : > { %v2806_v35 = vpop.f32.mrf.mxu2 }
 0xd2f   : > { %v2820_v30 = vpop.f32.mrf.mxu3 }
 0xd30   : > { %v2821_v32 = vadd.f32 %v2820_v30, %v2806_v35 }
 0xd32   : > { %v2835_v36 = vadd.f32 %v2834_v29, %v2821_v32 }
 0xd34   : > { %v2849_v37 = vadd.f32 %v2848_v33, %v2835_v36 }
 0xd36   : > { %v2853_v31 = vadd.f32 %v2849_v37, %v4820_v63  ;;  %v2808_v0 = vpop.f32.mrf.mxu2 }
 0xd37   : > { %v2822_v34 = vpop.f32.mrf.mxu3 }
 0xd38   : > { %v2859_v38 = vadd.f32 %v4031_v11, %v2853_v31  ;;  %v2823_v39 = vadd.f32 %v2822_v34, %v2808_v0 }
 0xd3a   : > { %2861 = vst [vmem:[#allocation2] sm:$0xff] %v2859_v38  ;;  %v2837_v40 = vadd.f32 %v2836_v41, %v2823_v39 }
 0xd3c   : > { %v2851_v43 = vadd.f32 %v2850_v42, %v2837_v40 }
 0xd3e   : > { %v2854_v50 = vadd.f32 %v2851_v43, %v4824_v2  ;;  %2866 = sbr.rel (%p3759_p1) target bundleno = 3806 (0xede), region = 120 }
 0xd40   : > { %v2860_v45 = vadd.f32 %v4031_v11, %v2854_v50 }
 0xd42   : > { %2862 = vst [vmem:[#allocation2 + $0x8] sm:$0xff] %v2860_v45 }
 0xd43   : > { %2869 = vadd.xlane.f32.xlu0 %v2859_v38  ;;  %v3923_v2 = vld [vmem:[%s5193_s2 + $0x38] sm:$0xff]  ;;  %v3922_v56 = vld [vmem:[%s5194_s1 + $0x30] sm:$0xff]  ;;  %v3921_v57 = vld [vmem:[%s5194_s1 + $0x28] sm:$0xff] }
 0xd44   : > { %2984 = vmatpush.bf16.msra.mxu0 %v3923_v2  ;;  %v3920_v52 = vld [vmem:[%s5194_s1 + $0x20] sm:$0xff]  ;;  %v3919_v58 = vld [vmem:[%s5194_s1 + $0x18] sm:$0xff]  ;;  %v3918_v59 = vld [vmem:[%s5194_s1 + $0x10] sm:$0xff] }
 0xd45   : > { %v3917_v15 = vld [vmem:[%s5194_s1 + $0x8] sm:$0xff]  ;;  %v3916_v61 = vld [vmem:[%s5194_s1] sm:$0xff] }
 0xd46   : > { %v4090_v22 = vld [vmem:[%s5195_s15] ss:$0 sm:$0xff] }
 0xd47   : > { %v4091_v27 = vld [vmem:[%s5196_s4] ss:$0 sm:$0xff] }
 0xd48   : > { %2985 = vmatpush.bf16.msra.mxu0 %v3922_v56 }
 0xd4b   : > { %2871 = vadd.xlane.f32.xlu0 %v2860_v45 }
 0xd4c   : > { %2986 = vmatpush.bf16.msra.mxu0 %v3921_v57 }
 0xd50   : > { %2987 = vmatpush.bf16.msra.mxu0 %v3920_v52 }
 0xd54   : > { %2988 = vmatpush.bf16.msra.mxu0 %v3919_v58 }
 0xd58   : > { %2989 = vmatpush.bf16.msra.mxu0 %v3918_v59 }
 0xd5c   : > { %2990 = vmatpush.bf16.msra.mxu0 %v3917_v15 }
 0xd60   : > { %2991 = vmatpush.bf16.msra.mxu0 %v3916_v61 }
 0xdb6   : > { %v2870_v44 = vpop.xlane.xlu0 %2869 }
 0xdb7   : > { %v2873_v63 = vmul.f32 %v2870_v44, %v4663_v12 }
 0xdb9   : > { %v2875_v46 = vsub.f32 %v2859_v38, %v2873_v63 }
 0xdbb   : > { %v2877_v47 = vmul.f32 %v2875_v46, %v2875_v46 }
 0xdbd   : > { %2879 = vadd.xlane.f32.xlu1 %v2877_v47 }
 0xdbe   : > { %v2872_v48 = vpop.xlane.xlu0 %2871 }
 0xdbf   : > { %v2874_v49 = vmul.f32 %v2872_v48, %v4663_v12 }
 0xdc1   : > { %v2876_v51 = vsub.f32 %v2860_v45, %v2874_v49 }
 0xdc3   : > { %v2878_v53 = vmul.f32 %v2876_v51, %v2876_v51 }
 0xdc5   : > { %2881 = vadd.xlane.f32.xlu1 %v2878_v53 }
 0xe30   : > { %v2880_v60 = vpop.xlane.xlu1 %2879 }
 0xe31   : > { %v2883_v13 = vmul.f32 %v2880_v60, %v4663_v12 }
 0xe33   : > { %v2885_v62 = vadd.f32 1e-05, %v2883_v13 }
 0xe35   : > { %4092 = vrsqrt.f32 %v2885_v62  ;;  %vm2893_vm1 = vweird.f32 %v2885_v62 }
 0xe38   : > { %v2882_v1 = vpop.xlane.xlu1 %2881 }
 0xe39   : > { %v2884_v3 = vmul.f32 %v2882_v1, %v4663_v12 }
 0xe3b   : > { %v4093_v4 = vpop.eup %4092  ;;  %v2886_v6 = vadd.f32 1e-05, %v2884_v3 }
 0xe3c   : > { %v2888_v5 = vmul.f32 %v4093_v4, %v2885_v62  ;;  %vm2894_vm0 = vweird.f32 %v4093_v4 }
 0xe3d   : > { %4094 = vrsqrt.f32 %v2886_v6  ;;  %vm2895_vm2 = vmor %vm2893_vm1, %vm2894_vm0  ;;  %vm2903_vm4 = vweird.f32 %v2886_v6 }
 0xe3e   : > { %v2889_v7 = vmul.f32 %v4093_v4, %v2888_v5 }
 0xe40   : > { %v2890_v9 = vmul.f32 0.5, %v2889_v7 }
 0xe42   : > { %v2891_v10 = vsub.f32 1.5, %v2890_v9 }
 0xe43   : > { %v4095_v14 = vpop.eup %4094 }
 0xe44   : > { %v2892_v19 = vmul.f32 %v4093_v4, %v2891_v10  ;;  %v2898_v17 = vmul.f32 %v4095_v14, %v2886_v6  ;;  %vm2904_vm3 = vweird.f32 %v4095_v14 }
 0xe45   : > { %vm2905_vm5 = vmor %vm2903_vm4, %vm2904_vm3 }
 0xe46   : > { %v2899_v18 = vmul.f32 %v4095_v14, %v2898_v17  ;;  %v2896_v20 = vsel %vm2895_vm2, %v4093_v4, %v2892_v19 }
 0xe47   : > { %v2907_v12 = vmul.f32 %v2896_v20, %v2875_v46 }
 0xe48   : > { %v2900_v8 = vmul.f32 0.5, %v2899_v18 }
 0xe49   : > { %v2912_v26 = vmul.f32 %v4090_v22, %v2907_v12 }
 0xe4a   : > { %v2901_v21 = vsub.f32 1.5, %v2900_v8 }
 0xe4b   : > { %v2917_v16 = vadd.f32 %v4091_v27, %v2912_v26 }
 0xe4c   : > { %v2902_v23 = vmul.f32 %v4095_v14, %v2901_v21 }
 0xe4e   : > { %v2906_v24 = vsel %vm2905_vm5, %v4095_v14, %v2902_v23 }
 0xe4f   : > { %v2908_v25 = vmul.f32 %v2906_v24, %v2876_v51 }
 0xe51   : > { %v2913_v54 = vmul.f32 %v4090_v22, %v2908_v25 }
 0xe53   : > { %v2918_v55 = vadd.f32 %v4091_v27, %v2913_v54 }
 0xe55   : > { %v2919_v28 = vpack.c.bf16 %v2918_v55, %v2917_v16 }
 0xe57   : > { %2992 = vmatmul.bf16.vlgmr.msra.gmra.mxu0 %v2919_v28 }
 0xed4   : > { %v2993_v35 = vpop.f32.mrf.mxu0 }
 0xed5   : > { %2998 = vst [vmem:[%s4484_s6] sm:$0xff] %v2993_v35 }
 0xedc   : > { %v2995_v29 = vpop.f32.mrf.mxu0 }
 0xedd   : > { %2999 = vst [vmem:[%s4484_s6 + $0x8] sm:$0xff] %v2995_v29 }
 0xede PF: > { %s5197_s2 = sld [smem:[#allocation10_spill]]  ;;  %s3018_s20 = sshll.u32 %s4484_s6, 4  ;;  %s3019_s20 = int_to_ptr.vmem [resolvable:$true] %s3018_s20 }
 0xedf   : > { %s5198_s27 = sld [smem:[#allocation7_spill]] }
 0xee0   : > { %s5200_s23 = sld [smem:[#allocation39_spill]] }
 0xee4   : > { %s3924_s0 = sshll.u32 %s5197_s2, 4 }
 0xee5   : > { %s5201_s26 = sand.u32 1, %s5198_s27  }
 0xee6   : > { %s3017_s21 = scalar_lea.hbm %s5200_s23, %s3924_s0  ;;  %s3001_s24 = scalar_lea.sflag [#allocation4], %s5201_s26 }
 0xee7   : > { %s3020_s29 = sshll.u32 %s3017_s21, 4  ;;  %s4116_s9 = scalar_lea.hbm %s5200_s23, 32  ;;  %s3021_s29 = int_to_ptr.hbm [resolvable:$true] %s3020_s29 }
 0xee8   : > { %s4110_s30 = sshra.s32 %s3021_s29, 4  ;;  %s4111_s30 = int_to_ptr.hbm [resolvable:$true] %s4110_s30 }
 0xee9   : > { %s4112_s5 = scalar_lea.hbm %s4111_s30, 16  ;;  %p4117_p6 = scmp.lt.s32.totalorder %s4111_s30, %s5200_s23 }
 0xeea   : > { %p4113_p2 = scmp.ne.s32.totalorder %s4111_s30, %s4112_s5  ;;  %p4118_p7 = scmp.lt.s32.totalorder %s4116_s9, %s4112_s5 }
 0xeec   : > { %p4114_p4 = pnand %p4113_p2, %p4376_p3  ;;  %p4119_p8 = por %p4118_p7, %p4117_p6 }
 0xeee   : > { %p4115_p5 = pneg %p4114_p4 }
 0xef0   : > { %p4120_p10 = pnand %p4119_p8, %p4115_p5 }
 0xef2   : > { %4123 = shalt.err (!%p4120_p10)
}
 0xef3   : > { %s4200_s6 = smov 128   ;;  %s4201_s10 = smov 8  }
 0xef4   : > { %3927 = dma.vmem_to_hbm [thread:$0]  (%p4376_p3), %s3019_s20, 256, %s3021_s29, %s3001_s24, %s4200_s6, %s4200_s6, %s4201_s10  }
 0xef5 PF: > { %s5202_s4 = sld [smem:[#allocation13_spill]] }
 0xef6   : > { %s5203_s2 = sld [smem:[#allocation6_spill]] }
 0xefb   : > { %p3933_p11 = scmp.ge.s32.totalorder %s5202_s4, 2 }
 0xefc   : > { %s3038_s0 = sand.u32 1, %s5203_s2  }
 0xefd   : > { %p3930_p12 = pnand %p3933_p11, %p4386_p9  ;;  %s3039_s3 = scalar_lea.sflag [#allocation4], %s3038_s0 }
 0xeff   : > { %p3931_p13 = pneg %p3930_p12 }
 0xf01   : > { %4157 = dma.done.wait (%p3931_p13), %s3039_s3, 256  }
 0xf02   : > { %4159 = vsyncadd (%p3931_p13), %s3039_s3, 4294967040  ;;  %s38_s0 = sadd.s32 1, %s5202_s4   ;;  %s5205_s5 = sld [smem:[#allocation7_spill]] }
 0xf03   : > { %p35_p0 = scmp.ge.s32.totalorder %s38_s0, 6   ;;  %s5206_s26 = sld [smem:[#allocation8_spill]] }
 0xf04   : > { %s5207_s27 = sld [smem:[#allocation18_spill]] }
 0xf05   : > { %s5208_s28 = sld [smem:[#allocation11_spill]]  ;;  %37 = sbr.rel (!%p35_p0) target bundleno = 27 (0x1b), region = 209 }
 0xf06   : > { %s5209_s6 = sld [smem:[#allocation12_spill]] }
 0xf07   : > { %s5210_s2 = sld [smem:[#allocation14_spill]] }
 0xf08   : > { %s5211_s29 = sld [smem:[#allocation16_spill]] }
 0xf0a   :  { %3053 = vsyncpa [#allocation4], 1 }
 0xf0b   :  { %3055 = vsyncpa [#allocation4 + $0x1], 1 }

</bundles_post_ra>
